<compile_context>
chip_gen: v7x
topology: tpu7x:2x2x1
jax: 0.10.0
libtpu: 0.0.40
codegen_flags: <defaults>
</compile_context>

<pallas_src>
import jax
import jax.numpy as jnp
import numpy as np
from jax import lax
from jax.experimental import pallas as pl
from jax.experimental.pallas import tpu as pltpu

_OFF = [(0, 0), (0, 1), (1, 0), (1, 1)]   # 2x2 max-pool window offsets


# ---------------------------------------------------------------------------
# Per-forward host-side work: pure layout plumbing (strided slices + stacks)
# ---------------------------------------------------------------------------
def _make_patches(x):
    """x: (B,1,32,32) -> (100, B*36); element [(a,c), (b,i,j)] = x[b,0,4i+a,4j+c].
    Every final output pixel (i,j) only ever looks at the 10x10 input window
    starting at (4i, 4j); (a,c) indexes inside that window."""
    B = x.shape[0]
    xs = x[:, 0]                                           # (B, 32, 32)
    rows = [xs[:, a:a + 21:4, :] for a in range(10)]       # (B, 6, 32) each
    xr = jnp.stack(rows, axis=0)                           # (10a, B, 6, 32)
    cols = [xr[:, :, :, c:c + 21:4] for c in range(10)]    # (10a, B, 6, 6) each
    y = jnp.stack(cols, axis=1)                            # (10a, 10c, B, 6, 6)
    return y.reshape(100, B * 36)                          # rows (a,c), cols (b,i,j)


# ---------------------------------------------------------------------------
# One-time weight repacking (kept out of the per-forward hot path)
# ---------------------------------------------------------------------------
def prepare_params(params):
    w1 = np.asarray(params["conv1_w"]).reshape(6, 3, 3)
    b1 = np.asarray(params["conv1_b"])
    w2 = np.asarray(params["conv2_w"])                     # (16, 6, 3, 3)
    b2 = np.asarray(params["conv2_b"])

    # conv1 weights replicated/scattered over (o1, o2, t2) so that a single
    # matmul against the (100, B*36) patch matrix yields every conv1 value
    # needed by every conv2 tap & pool offset. Channel dim padded 6 -> 8.
    weff = np.zeros((4, 4, 9, 8, 100), np.float32)
    for o1, (dy1, dx1) in enumerate(_OFF):
        for o2, (dy2, dx2) in enumerate(_OFF):
            for kh2 in range(3):
                for kw2 in range(3):
                    t2 = kh2 * 3 + kw2
                    for kh1 in range(3):
                        for kw1 in range(3):
                            a = 2 * (dy2 + kh2) + dy1 + kh1   # in [0, 10)
                            c = 2 * (dx2 + kw2) + dx1 + kw1   # in [0, 10)
                            weff[o1, o2, t2, :6, a * 10 + c] = w1[:, kh1, kw1]
    weff = weff.reshape(1152, 100)

    # conv1 bias tiled over rows (o2, t2, ch_pad8); pad channels get 0 bias.
    b1t = np.zeros((4, 9, 8), np.float32)
    b1t[:, :, :6] = b1[None, None, :]
    b1t = b1t.reshape(288, 1)

    # conv2 as a block-diagonal matmul over the 4 conv2 pool offsets:
    # rows (o2, oc), cols (o2', t2, ch_pad8); pad channel columns are zero.
    w2bd = np.zeros((4, 16, 4, 9, 8), np.float32)
    w2r = w2.transpose(0, 2, 3, 1).reshape(16, 9, 6)       # (oc, t2, ch)
    for o2 in range(4):
        w2bd[o2, :, o2, :, :6] = w2r
    w2bd = w2bd.reshape(64, 288)

    return {
        "weff": jnp.asarray(weff),                          # (1152, 100)
        "b1t": jnp.asarray(b1t),                            # (288, 1)
        "w2bd": jnp.asarray(w2bd),                          # (64, 288)
        "b2": jnp.asarray(b2.reshape(16, 1)),               # (16, 1)
        "wf1": jnp.asarray(params["fc1_w"]).T,              # (576, 120)
        "bf1": jnp.asarray(params["fc1_b"]).reshape(1, -1),
        "wf2": jnp.asarray(params["fc2_w"]).T,              # (120, 84)
        "bf2": jnp.asarray(params["fc2_b"]).reshape(1, -1),
        "wf3": jnp.asarray(params["fc3_w"]).T,              # (84, 10)
        "bf3": jnp.asarray(params["fc3_b"]).reshape(1, -1),
    }


# ---------------------------------------------------------------------------
# The single fused Pallas kernel
# ---------------------------------------------------------------------------
def _fused_kernel(y2_ref, weff_ref, b1t_ref, w2bd_ref, b2_ref,
                  wf1_ref, bf1_ref, wf2_ref, bf2_ref, wf3_ref, bf3_ref,
                  o_ref, fc1in_ref):
    B = fc1in_ref.shape[0]

    # ---- conv1 for all (o1, o2, t2, ch) replicas: ONE matmul ---------------
    y1 = jnp.dot(weff_ref[...], y2_ref[...],
                 preferred_element_type=jnp.float32)        # (1152, B*36)

    # 2x2 max-pool over conv1 pool offsets o1 (bias const per channel and relu
    # monotone, so max-then-(bias+relu) == (bias+relu)-then-max).
    p = jnp.maximum(jnp.maximum(y1[0:288], y1[288:576]),
                    jnp.maximum(y1[576:864], y1[864:1152]))
    p = jnp.maximum(p + b1t_ref[...], 0.0)                  # (288, B*36)

    # ---- conv2 (block-diag over the 4 pool offsets): ONE matmul ------------
    acc = jnp.dot(w2bd_ref[...], p,
                  preferred_element_type=jnp.float32)       # (64, B*36)
    z = jnp.maximum(jnp.maximum(acc[0:16], acc[16:32]),
                    jnp.maximum(acc[32:48], acc[48:64]))
    a2 = jnp.maximum(z + b2_ref[...], 0.0)                  # (16, B*36)

    # ---- flatten to torch .view order (c, i, j) into a lane-dense slab -----
    for b in range(B):
        for c in range(16):
            fc1in_ref[b:b + 1, c * 36:(c + 1) * 36] = a2[c:c + 1,
                                                         b * 36:(b + 1) * 36]

    # ---- fc1 -> relu -> fc2 -> relu -> fc3 ----------------------------------
    h = jnp.dot(fc1in_ref[...], wf1_ref[...], preferred_element_type=jnp.float32)
    h = jnp.maximum(h + bf1_ref[...], 0.0)
    h = jnp.dot(h, wf2_ref[...], preferred_element_type=jnp.float32)
    h = jnp.maximum(h + bf2_ref[...], 0.0)
    h = jnp.dot(h, wf3_ref[...], preferred_element_type=jnp.float32)
    o_ref[...] = (h + bf3_ref[...]).astype(o_ref.dtype)


# ---------------------------------------------------------------------------
# Wrapper
# ---------------------------------------------------------------------------
@jax.jit
def net_forward(x, prep):
    B = x.shape[0]
    y2 = _make_patches(x)                                   # (100, B*36)
    return pl.pallas_call(
        _fused_kernel,
        out_shape=jax.ShapeDtypeStruct((B, 10), jnp.float32),
        scratch_shapes=[pltpu.VMEM((B, 16 * 6 * 6), jnp.float32)],
    )(y2, prep["weff"], prep["b1t"], prep["w2bd"], prep["b2"],
      prep["wf1"], prep["bf1"], prep["wf2"], prep["bf2"],
      prep["wf3"], prep["bf3"])


# ---------------------------------------------------------------------------
# Deterministic parameter init (PyTorch-style uniform bounds) and reference
# ---------------------------------------------------------------------------
def init_params(key):
    ks = jax.random.split(key, 10)

    def u(k, shape, fan_in):
        bound = 1.0 / float(np.sqrt(fan_in))
        return jax.random.uniform(k, shape, jnp.float32, -bound, bound)

    return {
        "conv1_w": u(ks[0], (6, 1, 3, 3), 1 * 9),
        "conv1_b": u(ks[1], (6,), 1 * 9),
        "conv2_w": u(ks[2], (16, 6, 3, 3), 6 * 9),
        "conv2_b": u(ks[3], (16,), 6 * 9),
        "fc1_w": u(ks[4], (120, 16 * 6 * 6), 16 * 6 * 6),
        "fc1_b": u(ks[5], (120,), 16 * 6 * 6),
        "fc2_w": u(ks[6], (84, 120), 120),
        "fc2_b": u(ks[7], (84,), 120),
        "fc3_w": u(ks[8], (10, 84), 84),
        "fc3_b": u(ks[9], (10,), 84),
    }


def reference_forward(x, params):
    """Pure-JAX/XLA reference of the PyTorch forward, for validation."""
    def conv_block(y, w, b):
        y = lax.conv_general_dilated(
            y, w, (1, 1), "VALID", dimension_numbers=("NCHW", "OIHW", "NCHW"))
        y = jax.nn.relu(y + b[None, :, None, None])
        return lax.reduce_window(y, -jnp.inf, lax.max,
                                 (1, 1, 2, 2), (1, 1, 2, 2), "VALID")

    y = conv_block(x, params["conv1_w"], params["conv1_b"])
    y = conv_block(y, params["conv2_w"], params["conv2_b"])
    y = y.reshape(y.shape[0], -1)
    y = jax.nn.relu(y @ params["fc1_w"].T + params["fc1_b"])
    y = jax.nn.relu(y @ params["fc2_w"].T + params["fc2_b"])
    return y @ params["fc3_w"].T + params["fc3_b"]


if __name__ == "__main__":
    key = jax.random.PRNGKey(0)
    pkey, xkey = jax.random.split(key)
    params = init_params(pkey)
    prep = prepare_params(params)                  # one-time weight repacking
    x = jax.random.normal(xkey, (2, 1, 32, 32), jnp.float32)   # B=2, NCHW

    out = net_forward(x, prep)
    out = jax.block_until_ready(out)
    assert out.shape == (2, 10)
    assert bool(jnp.all(jnp.isfinite(out)))

    ref = reference_forward(x, params)
    np.testing.assert_allclose(np.asarray(out), np.asarray(ref),
                               rtol=2e-2, atol=2e-2)
    print("KERNEL_OK")
</pallas_src>

<mosaic_0001>
module attributes {stable_mosaic.version = 11 : i64} {
  func.func @_fused_kernel(%arg0: memref<100x72xf32, #tpu.memory_space<vmem>>, %arg1: memref<1152x100xf32, #tpu.memory_space<vmem>>, %arg2: memref<288x1xf32, #tpu.memory_space<vmem>>, %arg3: memref<64x288xf32, #tpu.memory_space<vmem>>, %arg4: memref<16x1xf32, #tpu.memory_space<vmem>>, %arg5: memref<576x120xf32, #tpu.memory_space<vmem>>, %arg6: memref<1x120xf32, #tpu.memory_space<vmem>>, %arg7: memref<120x84xf32, #tpu.memory_space<vmem>>, %arg8: memref<1x84xf32, #tpu.memory_space<vmem>>, %arg9: memref<84x10xf32, #tpu.memory_space<vmem>>, %arg10: memref<1x10xf32, #tpu.memory_space<vmem>>, %arg11: memref<2x10xf32, #tpu.memory_space<vmem>>, %arg12: memref<2x576xf32, #tpu.memory_space<vmem>>) attributes {dimension_semantics = [], scalar_prefetch = 0 : i64, scratch_operands = 1 : i64, tpu.core_type = #tpu.core_type<tc>} {
    %c0 = arith.constant 0 : index
    %c0_0 = arith.constant 0 : index
    %0 = vector.load %arg1[%c0, %c0_0] : memref<1152x100xf32, #tpu.memory_space<vmem>>, vector<1152x100xf32>
    %c0_1 = arith.constant 0 : index
    %c0_2 = arith.constant 0 : index
    %1 = vector.load %arg0[%c0_1, %c0_2] : memref<100x72xf32, #tpu.memory_space<vmem>>, vector<100x72xf32>
    %cst = arith.constant dense<0.000000e+00> : vector<1152x72xf32>
    %2 = tpu.matmul %0, %1, %cst {dimension_numbers = #tpu.dot_dimension_numbers<[1], [0], [0], [1], [0, 0, 1, 1], [], []>} : vector<1152x100xf32>, vector<100x72xf32>, vector<1152x72xf32> -> vector<1152x72xf32>
    %3 = vector.extract_strided_slice %2 {offsets = [0, 0], sizes = [288, 72], strides = [1, 1]} : vector<1152x72xf32> to vector<288x72xf32>
    %4 = vector.extract_strided_slice %2 {offsets = [288, 0], sizes = [288, 72], strides = [1, 1]} : vector<1152x72xf32> to vector<288x72xf32>
    %5 = arith.maximumf %3, %4 : vector<288x72xf32>
    %6 = vector.extract_strided_slice %2 {offsets = [576, 0], sizes = [288, 72], strides = [1, 1]} : vector<1152x72xf32> to vector<288x72xf32>
    %7 = vector.extract_strided_slice %2 {offsets = [864, 0], sizes = [288, 72], strides = [1, 1]} : vector<1152x72xf32> to vector<288x72xf32>
    %8 = arith.maximumf %6, %7 : vector<288x72xf32>
    %9 = arith.maximumf %5, %8 : vector<288x72xf32>
    %c0_3 = arith.constant 0 : index
    %c0_4 = arith.constant 0 : index
    %10 = vector.load %arg2[%c0_3, %c0_4] : memref<288x1xf32, #tpu.memory_space<vmem>>, vector<288x1xf32>
    %11 = vector.broadcast %10 : vector<288x1xf32> to vector<288x72xf32>
    %12 = arith.addf %9, %11 : vector<288x72xf32>
    %cst_5 = arith.constant 0.000000e+00 : f32
    %13 = vector.broadcast %cst_5 : f32 to vector<288x72xf32>
    %14 = arith.maximumf %12, %13 : vector<288x72xf32>
    %c0_6 = arith.constant 0 : index
    %c0_7 = arith.constant 0 : index
    %15 = vector.load %arg3[%c0_6, %c0_7] : memref<64x288xf32, #tpu.memory_space<vmem>>, vector<64x288xf32>
    %cst_8 = arith.constant dense<0.000000e+00> : vector<64x72xf32>
    %16 = tpu.matmul %15, %14, %cst_8 {dimension_numbers = #tpu.dot_dimension_numbers<[1], [0], [0], [1], [0, 0, 1, 1], [], []>} : vector<64x288xf32>, vector<288x72xf32>, vector<64x72xf32> -> vector<64x72xf32>
    %17 = vector.extract_strided_slice %16 {offsets = [0, 0], sizes = [16, 72], strides = [1, 1]} : vector<64x72xf32> to vector<16x72xf32>
    %18 = vector.extract_strided_slice %16 {offsets = [16, 0], sizes = [16, 72], strides = [1, 1]} : vector<64x72xf32> to vector<16x72xf32>
    %19 = arith.maximumf %17, %18 : vector<16x72xf32>
    %20 = vector.extract_strided_slice %16 {offsets = [32, 0], sizes = [16, 72], strides = [1, 1]} : vector<64x72xf32> to vector<16x72xf32>
    %21 = vector.extract_strided_slice %16 {offsets = [48, 0], sizes = [16, 72], strides = [1, 1]} : vector<64x72xf32> to vector<16x72xf32>
    %22 = arith.maximumf %20, %21 : vector<16x72xf32>
    %23 = arith.maximumf %19, %22 : vector<16x72xf32>
    %c0_9 = arith.constant 0 : index
    %c0_10 = arith.constant 0 : index
    %24 = vector.load %arg4[%c0_9, %c0_10] : memref<16x1xf32, #tpu.memory_space<vmem>>, vector<16x1xf32>
    %25 = vector.broadcast %24 : vector<16x1xf32> to vector<16x72xf32>
    %26 = arith.addf %23, %25 : vector<16x72xf32>
    %cst_11 = arith.constant 0.000000e+00 : f32
    %27 = vector.broadcast %cst_11 : f32 to vector<16x72xf32>
    %28 = arith.maximumf %26, %27 : vector<16x72xf32>
    %29 = vector.extract_strided_slice %28 {offsets = [0, 0], sizes = [1, 36], strides = [1, 1]} : vector<16x72xf32> to vector<1x36xf32>
    %c0_12 = arith.constant 0 : index
    %c0_13 = arith.constant 0 : index
    %30 = vector.load %arg12[%c0_12, %c0_13] : memref<2x576xf32, #tpu.memory_space<vmem>>, vector<1x36xf32>
    tpu.vector_store %arg12[%c0_12, %c0_13], %29 {strides = array<i32>} : memref<2x576xf32, #tpu.memory_space<vmem>>, vector<1x36xf32>,
    %31 = vector.extract_strided_slice %28 {offsets = [1, 0], sizes = [1, 36], strides = [1, 1]} : vector<16x72xf32> to vector<1x36xf32>
    %c0_14 = arith.constant 0 : index
    %c36 = arith.constant 36 : index
    %32 = vector.load %arg12[%c0_14, %c36] : memref<2x576xf32, #tpu.memory_space<vmem>>, vector<1x36xf32>
    tpu.vector_store %arg12[%c0_14, %c36], %31 {strides = array<i32>} : memref<2x576xf32, #tpu.memory_space<vmem>>, vector<1x36xf32>,
    %33 = vector.extract_strided_slice %28 {offsets = [2, 0], sizes = [1, 36], strides = [1, 1]} : vector<16x72xf32> to vector<1x36xf32>
    %c0_15 = arith.constant 0 : index
    %c72 = arith.constant 72 : index
    %34 = vector.load %arg12[%c0_15, %c72] : memref<2x576xf32, #tpu.memory_space<vmem>>, vector<1x36xf32>
    tpu.vector_store %arg12[%c0_15, %c72], %33 {strides = array<i32>} : memref<2x576xf32, #tpu.memory_space<vmem>>, vector<1x36xf32>,
    %35 = vector.extract_strided_slice %28 {offsets = [3, 0], sizes = [1, 36], strides = [1, 1]} : vector<16x72xf32> to vector<1x36xf32>
    %c0_16 = arith.constant 0 : index
    %c108 = arith.constant 108 : index
    %36 = vector.load %arg12[%c0_16, %c108] : memref<2x576xf32, #tpu.memory_space<vmem>>, vector<1x36xf32>
    tpu.vector_store %arg12[%c0_16, %c108], %35 {strides = array<i32>} : memref<2x576xf32, #tpu.memory_space<vmem>>, vector<1x36xf32>,
    %37 = vector.extract_strided_slice %28 {offsets = [4, 0], sizes = [1, 36], strides = [1, 1]} : vector<16x72xf32> to vector<1x36xf32>
    %c0_17 = arith.constant 0 : index
    %c144 = arith.constant 144 : index
    %38 = vector.load %arg12[%c0_17, %c144] : memref<2x576xf32, #tpu.memory_space<vmem>>, vector<1x36xf32>
    tpu.vector_store %arg12[%c0_17, %c144], %37 {strides = array<i32>} : memref<2x576xf32, #tpu.memory_space<vmem>>, vector<1x36xf32>,
    %39 = vector.extract_strided_slice %28 {offsets = [5, 0], sizes = [1, 36], strides = [1, 1]} : vector<16x72xf32> to vector<1x36xf32>
    %c0_18 = arith.constant 0 : index
    %c180 = arith.constant 180 : index
    %40 = vector.load %arg12[%c0_18, %c180] : memref<2x576xf32, #tpu.memory_space<vmem>>, vector<1x36xf32>
    tpu.vector_store %arg12[%c0_18, %c180], %39 {strides = array<i32>} : memref<2x576xf32, #tpu.memory_space<vmem>>, vector<1x36xf32>,
    %41 = vector.extract_strided_slice %28 {offsets = [6, 0], sizes = [1, 36], strides = [1, 1]} : vector<16x72xf32> to vector<1x36xf32>
    %c0_19 = arith.constant 0 : index
    %c216 = arith.constant 216 : index
    %42 = vector.load %arg12[%c0_19, %c216] : memref<2x576xf32, #tpu.memory_space<vmem>>, vector<1x36xf32>
    tpu.vector_store %arg12[%c0_19, %c216], %41 {strides = array<i32>} : memref<2x576xf32, #tpu.memory_space<vmem>>, vector<1x36xf32>,
    %43 = vector.extract_strided_slice %28 {offsets = [7, 0], sizes = [1, 36], strides = [1, 1]} : vector<16x72xf32> to vector<1x36xf32>
    %c0_20 = arith.constant 0 : index
    %c252 = arith.constant 252 : index
    %44 = vector.load %arg12[%c0_20, %c252] : memref<2x576xf32, #tpu.memory_space<vmem>>, vector<1x36xf32>
    tpu.vector_store %arg12[%c0_20, %c252], %43 {strides = array<i32>} : memref<2x576xf32, #tpu.memory_space<vmem>>, vector<1x36xf32>,
    %45 = vector.extract_strided_slice %28 {offsets = [8, 0], sizes = [1, 36], strides = [1, 1]} : vector<16x72xf32> to vector<1x36xf32>
    %c0_21 = arith.constant 0 : index
    %c288 = arith.constant 288 : index
    %46 = vector.load %arg12[%c0_21, %c288] : memref<2x576xf32, #tpu.memory_space<vmem>>, vector<1x36xf32>
    tpu.vector_store %arg12[%c0_21, %c288], %45 {strides = array<i32>} : memref<2x576xf32, #tpu.memory_space<vmem>>, vector<1x36xf32>,
    %47 = vector.extract_strided_slice %28 {offsets = [9, 0], sizes = [1, 36], strides = [1, 1]} : vector<16x72xf32> to vector<1x36xf32>
    %c0_22 = arith.constant 0 : index
    %c324 = arith.constant 324 : index
    %48 = vector.load %arg12[%c0_22, %c324] : memref<2x576xf32, #tpu.memory_space<vmem>>, vector<1x36xf32>
    tpu.vector_store %arg12[%c0_22, %c324], %47 {strides = array<i32>} : memref<2x576xf32, #tpu.memory_space<vmem>>, vector<1x36xf32>,
    %49 = vector.extract_strided_slice %28 {offsets = [10, 0], sizes = [1, 36], strides = [1, 1]} : vector<16x72xf32> to vector<1x36xf32>
    %c0_23 = arith.constant 0 : index
    %c360 = arith.constant 360 : index
    %50 = vector.load %arg12[%c0_23, %c360] : memref<2x576xf32, #tpu.memory_space<vmem>>, vector<1x36xf32>
    tpu.vector_store %arg12[%c0_23, %c360], %49 {strides = array<i32>} : memref<2x576xf32, #tpu.memory_space<vmem>>, vector<1x36xf32>,
    %51 = vector.extract_strided_slice %28 {offsets = [11, 0], sizes = [1, 36], strides = [1, 1]} : vector<16x72xf32> to vector<1x36xf32>
    %c0_24 = arith.constant 0 : index
    %c396 = arith.constant 396 : index
    %52 = vector.load %arg12[%c0_24, %c396] : memref<2x576xf32, #tpu.memory_space<vmem>>, vector<1x36xf32>
    tpu.vector_store %arg12[%c0_24, %c396], %51 {strides = array<i32>} : memref<2x576xf32, #tpu.memory_space<vmem>>, vector<1x36xf32>,
    %53 = vector.extract_strided_slice %28 {offsets = [12, 0], sizes = [1, 36], strides = [1, 1]} : vector<16x72xf32> to vector<1x36xf32>
    %c0_25 = arith.constant 0 : index
    %c432 = arith.constant 432 : index
    %54 = vector.load %arg12[%c0_25, %c432] : memref<2x576xf32, #tpu.memory_space<vmem>>, vector<1x36xf32>
    tpu.vector_store %arg12[%c0_25, %c432], %53 {strides = array<i32>} : memref<2x576xf32, #tpu.memory_space<vmem>>, vector<1x36xf32>,
    %55 = vector.extract_strided_slice %28 {offsets = [13, 0], sizes = [1, 36], strides = [1, 1]} : vector<16x72xf32> to vector<1x36xf32>
    %c0_26 = arith.constant 0 : index
    %c468 = arith.constant 468 : index
    %56 = vector.load %arg12[%c0_26, %c468] : memref<2x576xf32, #tpu.memory_space<vmem>>, vector<1x36xf32>
    tpu.vector_store %arg12[%c0_26, %c468], %55 {strides = array<i32>} : memref<2x576xf32, #tpu.memory_space<vmem>>, vector<1x36xf32>,
    %57 = vector.extract_strided_slice %28 {offsets = [14, 0], sizes = [1, 36], strides = [1, 1]} : vector<16x72xf32> to vector<1x36xf32>
    %c0_27 = arith.constant 0 : index
    %c504 = arith.constant 504 : index
    %58 = vector.load %arg12[%c0_27, %c504] : memref<2x576xf32, #tpu.memory_space<vmem>>, vector<1x36xf32>
    tpu.vector_store %arg12[%c0_27, %c504], %57 {strides = array<i32>} : memref<2x576xf32, #tpu.memory_space<vmem>>, vector<1x36xf32>,
    %59 = vector.extract_strided_slice %28 {offsets = [15, 0], sizes = [1, 36], strides = [1, 1]} : vector<16x72xf32> to vector<1x36xf32>
    %c0_28 = arith.constant 0 : index
    %c540 = arith.constant 540 : index
    %60 = vector.load %arg12[%c0_28, %c540] : memref<2x576xf32, #tpu.memory_space<vmem>>, vector<1x36xf32>
    tpu.vector_store %arg12[%c0_28, %c540], %59 {strides = array<i32>} : memref<2x576xf32, #tpu.memory_space<vmem>>, vector<1x36xf32>,
    %61 = vector.extract_strided_slice %28 {offsets = [0, 36], sizes = [1, 36], strides = [1, 1]} : vector<16x72xf32> to vector<1x36xf32>
    %c1 = arith.constant 1 : index
    %c0_29 = arith.constant 0 : index
    %62 = vector.load %arg12[%c1, %c0_29] : memref<2x576xf32, #tpu.memory_space<vmem>>, vector<1x36xf32>
    tpu.vector_store %arg12[%c1, %c0_29], %61 {strides = array<i32>} : memref<2x576xf32, #tpu.memory_space<vmem>>, vector<1x36xf32>,
    %63 = vector.extract_strided_slice %28 {offsets = [1, 36], sizes = [1, 36], strides = [1, 1]} : vector<16x72xf32> to vector<1x36xf32>
    %c1_30 = arith.constant 1 : index
    %c36_31 = arith.constant 36 : index
    %64 = vector.load %arg12[%c1_30, %c36_31] : memref<2x576xf32, #tpu.memory_space<vmem>>, vector<1x36xf32>
    tpu.vector_store %arg12[%c1_30, %c36_31], %63 {strides = array<i32>} : memref<2x576xf32, #tpu.memory_space<vmem>>, vector<1x36xf32>,
    %65 = vector.extract_strided_slice %28 {offsets = [2, 36], sizes = [1, 36], strides = [1, 1]} : vector<16x72xf32> to vector<1x36xf32>
    %c1_32 = arith.constant 1 : index
    %c72_33 = arith.constant 72 : index
    %66 = vector.load %arg12[%c1_32, %c72_33] : memref<2x576xf32, #tpu.memory_space<vmem>>, vector<1x36xf32>
    tpu.vector_store %arg12[%c1_32, %c72_33], %65 {strides = array<i32>} : memref<2x576xf32, #tpu.memory_space<vmem>>, vector<1x36xf32>,
    %67 = vector.extract_strided_slice %28 {offsets = [3, 36], sizes = [1, 36], strides = [1, 1]} : vector<16x72xf32> to vector<1x36xf32>
    %c1_34 = arith.constant 1 : index
    %c108_35 = arith.constant 108 : index
    %68 = vector.load %arg12[%c1_34, %c108_35] : memref<2x576xf32, #tpu.memory_space<vmem>>, vector<1x36xf32>
    tpu.vector_store %arg12[%c1_34, %c108_35], %67 {strides = array<i32>} : memref<2x576xf32, #tpu.memory_space<vmem>>, vector<1x36xf32>,
    %69 = vector.extract_strided_slice %28 {offsets = [4, 36], sizes = [1, 36], strides = [1, 1]} : vector<16x72xf32> to vector<1x36xf32>
    %c1_36 = arith.constant 1 : index
    %c144_37 = arith.constant 144 : index
    %70 = vector.load %arg12[%c1_36, %c144_37] : memref<2x576xf32, #tpu.memory_space<vmem>>, vector<1x36xf32>
    tpu.vector_store %arg12[%c1_36, %c144_37], %69 {strides = array<i32>} : memref<2x576xf32, #tpu.memory_space<vmem>>, vector<1x36xf32>,
    %71 = vector.extract_strided_slice %28 {offsets = [5, 36], sizes = [1, 36], strides = [1, 1]} : vector<16x72xf32> to vector<1x36xf32>
    %c1_38 = arith.constant 1 : index
    %c180_39 = arith.constant 180 : index
    %72 = vector.load %arg12[%c1_38, %c180_39] : memref<2x576xf32, #tpu.memory_space<vmem>>, vector<1x36xf32>
    tpu.vector_store %arg12[%c1_38, %c180_39], %71 {strides = array<i32>} : memref<2x576xf32, #tpu.memory_space<vmem>>, vector<1x36xf32>,
    %73 = vector.extract_strided_slice %28 {offsets = [6, 36], sizes = [1, 36], strides = [1, 1]} : vector<16x72xf32> to vector<1x36xf32>
    %c1_40 = arith.constant 1 : index
    %c216_41 = arith.constant 216 : index
    %74 = vector.load %arg12[%c1_40, %c216_41] : memref<2x576xf32, #tpu.memory_space<vmem>>, vector<1x36xf32>
    tpu.vector_store %arg12[%c1_40, %c216_41], %73 {strides = array<i32>} : memref<2x576xf32, #tpu.memory_space<vmem>>, vector<1x36xf32>,
    %75 = vector.extract_strided_slice %28 {offsets = [7, 36], sizes = [1, 36], strides = [1, 1]} : vector<16x72xf32> to vector<1x36xf32>
    %c1_42 = arith.constant 1 : index
    %c252_43 = arith.constant 252 : index
    %76 = vector.load %arg12[%c1_42, %c252_43] : memref<2x576xf32, #tpu.memory_space<vmem>>, vector<1x36xf32>
    tpu.vector_store %arg12[%c1_42, %c252_43], %75 {strides = array<i32>} : memref<2x576xf32, #tpu.memory_space<vmem>>, vector<1x36xf32>,
    %77 = vector.extract_strided_slice %28 {offsets = [8, 36], sizes = [1, 36], strides = [1, 1]} : vector<16x72xf32> to vector<1x36xf32>
    %c1_44 = arith.constant 1 : index
    %c288_45 = arith.constant 288 : index
    %78 = vector.load %arg12[%c1_44, %c288_45] : memref<2x576xf32, #tpu.memory_space<vmem>>, vector<1x36xf32>
    tpu.vector_store %arg12[%c1_44, %c288_45], %77 {strides = array<i32>} : memref<2x576xf32, #tpu.memory_space<vmem>>, vector<1x36xf32>,
    %79 = vector.extract_strided_slice %28 {offsets = [9, 36], sizes = [1, 36], strides = [1, 1]} : vector<16x72xf32> to vector<1x36xf32>
    %c1_46 = arith.constant 1 : index
    %c324_47 = arith.constant 324 : index
    %80 = vector.load %arg12[%c1_46, %c324_47] : memref<2x576xf32, #tpu.memory_space<vmem>>, vector<1x36xf32>
    tpu.vector_store %arg12[%c1_46, %c324_47], %79 {strides = array<i32>} : memref<2x576xf32, #tpu.memory_space<vmem>>, vector<1x36xf32>,
    %81 = vector.extract_strided_slice %28 {offsets = [10, 36], sizes = [1, 36], strides = [1, 1]} : vector<16x72xf32> to vector<1x36xf32>
    %c1_48 = arith.constant 1 : index
    %c360_49 = arith.constant 360 : index
    %82 = vector.load %arg12[%c1_48, %c360_49] : memref<2x576xf32, #tpu.memory_space<vmem>>, vector<1x36xf32>
    tpu.vector_store %arg12[%c1_48, %c360_49], %81 {strides = array<i32>} : memref<2x576xf32, #tpu.memory_space<vmem>>, vector<1x36xf32>,
    %83 = vector.extract_strided_slice %28 {offsets = [11, 36], sizes = [1, 36], strides = [1, 1]} : vector<16x72xf32> to vector<1x36xf32>
    %c1_50 = arith.constant 1 : index
    %c396_51 = arith.constant 396 : index
    %84 = vector.load %arg12[%c1_50, %c396_51] : memref<2x576xf32, #tpu.memory_space<vmem>>, vector<1x36xf32>
    tpu.vector_store %arg12[%c1_50, %c396_51], %83 {strides = array<i32>} : memref<2x576xf32, #tpu.memory_space<vmem>>, vector<1x36xf32>,
    %85 = vector.extract_strided_slice %28 {offsets = [12, 36], sizes = [1, 36], strides = [1, 1]} : vector<16x72xf32> to vector<1x36xf32>
    %c1_52 = arith.constant 1 : index
    %c432_53 = arith.constant 432 : index
    %86 = vector.load %arg12[%c1_52, %c432_53] : memref<2x576xf32, #tpu.memory_space<vmem>>, vector<1x36xf32>
    tpu.vector_store %arg12[%c1_52, %c432_53], %85 {strides = array<i32>} : memref<2x576xf32, #tpu.memory_space<vmem>>, vector<1x36xf32>,
    %87 = vector.extract_strided_slice %28 {offsets = [13, 36], sizes = [1, 36], strides = [1, 1]} : vector<16x72xf32> to vector<1x36xf32>
    %c1_54 = arith.constant 1 : index
    %c468_55 = arith.constant 468 : index
    %88 = vector.load %arg12[%c1_54, %c468_55] : memref<2x576xf32, #tpu.memory_space<vmem>>, vector<1x36xf32>
    tpu.vector_store %arg12[%c1_54, %c468_55], %87 {strides = array<i32>} : memref<2x576xf32, #tpu.memory_space<vmem>>, vector<1x36xf32>,
    %89 = vector.extract_strided_slice %28 {offsets = [14, 36], sizes = [1, 36], strides = [1, 1]} : vector<16x72xf32> to vector<1x36xf32>
    %c1_56 = arith.constant 1 : index
    %c504_57 = arith.constant 504 : index
    %90 = vector.load %arg12[%c1_56, %c504_57] : memref<2x576xf32, #tpu.memory_space<vmem>>, vector<1x36xf32>
    tpu.vector_store %arg12[%c1_56, %c504_57], %89 {strides = array<i32>} : memref<2x576xf32, #tpu.memory_space<vmem>>, vector<1x36xf32>,
    %91 = vector.extract_strided_slice %28 {offsets = [15, 36], sizes = [1, 36], strides = [1, 1]} : vector<16x72xf32> to vector<1x36xf32>
    %c1_58 = arith.constant 1 : index
    %c540_59 = arith.constant 540 : index
    %92 = vector.load %arg12[%c1_58, %c540_59] : memref<2x576xf32, #tpu.memory_space<vmem>>, vector<1x36xf32>
    tpu.vector_store %arg12[%c1_58, %c540_59], %91 {strides = array<i32>} : memref<2x576xf32, #tpu.memory_space<vmem>>, vector<1x36xf32>,
    %c0_60 = arith.constant 0 : index
    %c0_61 = arith.constant 0 : index
    %93 = vector.load %arg12[%c0_60, %c0_61] : memref<2x576xf32, #tpu.memory_space<vmem>>, vector<2x576xf32>
    %c0_62 = arith.constant 0 : index
    %c0_63 = arith.constant 0 : index
    %94 = vector.load %arg5[%c0_62, %c0_63] : memref<576x120xf32, #tpu.memory_space<vmem>>, vector<576x120xf32>
    %cst_64 = arith.constant dense<0.000000e+00> : vector<2x120xf32>
    %95 = tpu.matmul %93, %94, %cst_64 {dimension_numbers = #tpu.dot_dimension_numbers<[1], [0], [0], [1], [0, 0, 1, 1], [], []>} : vector<2x576xf32>, vector<576x120xf32>, vector<2x120xf32> -> vector<2x120xf32>
    %c0_65 = arith.constant 0 : index
    %c0_66 = arith.constant 0 : index
    %96 = vector.load %arg6[%c0_65, %c0_66] : memref<1x120xf32, #tpu.memory_space<vmem>>, vector<1x120xf32>
    %97 = vector.broadcast %96 : vector<1x120xf32> to vector<2x120xf32>
    %98 = arith.addf %95, %97 : vector<2x120xf32>
    %cst_67 = arith.constant 0.000000e+00 : f32
    %99 = vector.broadcast %cst_67 : f32 to vector<2x120xf32>
    %100 = arith.maximumf %98, %99 : vector<2x120xf32>
    %c0_68 = arith.constant 0 : index
    %c0_69 = arith.constant 0 : index
    %101 = vector.load %arg7[%c0_68, %c0_69] : memref<120x84xf32, #tpu.memory_space<vmem>>, vector<120x84xf32>
    %cst_70 = arith.constant dense<0.000000e+00> : vector<2x84xf32>
    %102 = tpu.matmul %100, %101, %cst_70 {dimension_numbers = #tpu.dot_dimension_numbers<[1], [0], [0], [1], [0, 0, 1, 1], [], []>} : vector<2x120xf32>, vector<120x84xf32>, vector<2x84xf32> -> vector<2x84xf32>
    %c0_71 = arith.constant 0 : index
    %c0_72 = arith.constant 0 : index
    %103 = vector.load %arg8[%c0_71, %c0_72] : memref<1x84xf32, #tpu.memory_space<vmem>>, vector<1x84xf32>
    %104 = vector.broadcast %103 : vector<1x84xf32> to vector<2x84xf32>
    %105 = arith.addf %102, %104 : vector<2x84xf32>
    %cst_73 = arith.constant 0.000000e+00 : f32
    %106 = vector.broadcast %cst_73 : f32 to vector<2x84xf32>
    %107 = arith.maximumf %105, %106 : vector<2x84xf32>
    %c0_74 = arith.constant 0 : index
    %c0_75 = arith.constant 0 : index
    %108 = vector.load %arg9[%c0_74, %c0_75] : memref<84x10xf32, #tpu.memory_space<vmem>>, vector<84x10xf32>
    %cst_76 = arith.constant dense<0.000000e+00> : vector<2x10xf32>
    %109 = tpu.matmul %107, %108, %cst_76 {dimension_numbers = #tpu.dot_dimension_numbers<[1], [0], [0], [1], [0, 0, 1, 1], [], []>} : vector<2x84xf32>, vector<84x10xf32>, vector<2x10xf32> -> vector<2x10xf32>
    %c0_77 = arith.constant 0 : index
    %c0_78 = arith.constant 0 : index
    %110 = vector.load %arg10[%c0_77, %c0_78] : memref<1x10xf32, #tpu.memory_space<vmem>>, vector<1x10xf32>
    %111 = vector.broadcast %110 : vector<1x10xf32> to vector<2x10xf32>
    %112 = arith.addf %109, %111 : vector<2x10xf32>
    %c0_79 = arith.constant 0 : index
    %c0_80 = arith.constant 0 : index
    %113 = vector.load %arg11[%c0_79, %c0_80] : memref<2x10xf32, #tpu.memory_space<vmem>>, vector<2x10xf32>
    tpu.vector_store %arg11[%c0_79, %c0_80], %112 {strides = array<i32>} : memref<2x10xf32, #tpu.memory_space<vmem>>, vector<2x10xf32>,
    return
  }
}

</mosaic_0001>

<bundles_post_ra>
// kernel: net_forward.1
= control target key start
LH: loop header
LB: loop body
LE: loop exit
PB: predicated region body
PF: predicated region fallthrough
CT: control target
= control target key end

     0   :  { %vm196_vm0 = vcmask 818176   ;;  %vm629_vm1 = vcmask 1043456   ;;  %s5797_s0 = inlined_call_operand.vmem [shape: f32[100,72], index: 0, kind: input, shape index: {}]   ;;  %s5798_s1 = inlined_call_operand.vmem [shape: f32[1152,100], index: 1, kind: input, shape index: {}]   ;;  %s5799_s2 = inlined_call_operand.vmem [shape: f32[288,1], index: 2, kind: input, shape index: {}]   ;;  %s5800_s3 = inlined_call_operand.vmem [shape: f32[64,288], index: 3, kind: input, shape index: {}]   ;;  %s5801_s4 = inlined_call_operand.vmem [shape: f32[16,1], index: 4, kind: input, shape index: {}]   ;;  %s5802_s5 = inlined_call_operand.vmem [shape: f32[576,120], index: 5, kind: input, shape index: {}]   ;;  %s5803_s6 = inlined_call_operand.vmem [shape: f32[1,120], index: 6, kind: input, shape index: {}]   ;;  %s5804_s7 = inlined_call_operand.vmem [shape: f32[120,84], index: 7, kind: input, shape index: {}]   ;;  %s5805_s8 = inlined_call_operand.vmem [shape: f32[1,84], index: 8, kind: input, shape index: {}]   ;;  %s5806_s9 = inlined_call_operand.vmem [shape: f32[84,10], index: 9, kind: input, shape index: {}]   ;;  %s5807_s10 = inlined_call_operand.vmem [shape: f32[1,10], index: 10, kind: input, shape index: {}]   ;;  %s5808_s11 = inlined_call_operand.hbm [shape: f32[2,10], index: 11, kind: output, shape index: {}]  }
   0x1   :  { %v183_v0 = vld [vmem:[%s5797_s0] sm:$0xff]  ;;  %v184_v1 = vld [vmem:[%s5797_s0 + $0x8] sm:$0xff]  ;;  %v185_v2 = vld [vmem:[%s5797_s0 + $0x10] sm:$0xff] }
   0x2   :  { %v3681_v3 = vpack.c.bf16 %v184_v1, %v183_v0  ;;  %v186_v4 = vld [vmem:[%s5797_s0 + $0x18] sm:$0xff]  ;;  %v187_v6 = vld [vmem:[%s5797_s0 + $0x20] sm:$0xff]  ;;  %v188_v7 = vld [vmem:[%s5797_s0 + $0x28] sm:$0xff] }
   0x3   :  { %v3685_v5 = vpack.c.bf16 %v186_v4, %v185_v2  ;;  %v39_v8 = vld [vmem:[%s5798_s1] sm:$0xff]  ;;  %v3689_v9 = vpack.c.bf16 %v188_v7, %v187_v6  ;;  %v189_v10 = vld [vmem:[%s5797_s0 + $0x30] sm:$0xff]  ;;  %v190_v11 = vld [vmem:[%s5797_s0 + $0x38] sm:$0xff] }
   0x4   :  { %3682 = vmatprep.subr.bf16.mxu0 %v3681_v3  ;;  %3857 = vmatprep.subr.bf16.mxu1 %v3681_v3  ;;  %v3693_v12 = vpack.c.bf16 %v190_v11, %v189_v10  ;;  %v191_v13 = vld [vmem:[%s5797_s0 + $0x40] sm:$0xff]  ;;  %v192_v14 = vld [vmem:[%s5797_s0 + $0x48] sm:$0xff]  ;;  %v193_v16 = vld [vmem:[%s5797_s0 + $0x50] sm:$0xff] }
   0x5   :  { %3684 = vmatpush3.bf16.msra.mxu0 %v3681_v3  ;;  %3864 = vmatpush3.bf16.msra.mxu1 %v3681_v3  ;;  %v3697_v15 = vpack.c.bf16 %v192_v14, %v191_v13  ;;  %v194_v17 = vld [vmem:[%s5797_s0 + $0x58] sm:$0xff]  ;;  %v195_v19 = vld [vmem:[%s5797_s0 + $0x60] sm:$0xf]  ;;  %v40_v20 = vld [vmem:[%s5798_s1 + $0x8] sm:$0xff] }
   0x6   :  { %3686 = vmatprep.subr.bf16.mxu0 %v3685_v5  ;;  %3368 = vmatprep.mubr.msk.f32.mxu0 %vm196_vm0, %v39_v8  ;;  %v3701_v18 = vpack.c.bf16 %v194_v17, %v193_v16 }
   0x7   :  { %3858 = vmatprep.subr.bf16.mxu1 %v3685_v5 }
   0x9   :  { %3688 = vmatpush3.bf16.msra.mxu0 %v3685_v5  ;;  %3865 = vmatpush3.bf16.msra.mxu1 %v3685_v5 }
   0xa   :  { %3690 = vmatprep.subr.bf16.mxu0 %v3689_v9  ;;  %3859 = vmatprep.subr.bf16.mxu1 %v3689_v9 }
   0xd   :  { %3692 = vmatpush3.bf16.msra.mxu0 %v3689_v9  ;;  %3866 = vmatpush3.bf16.msra.mxu1 %v3689_v9 }
   0xe   :  { %3694 = vmatprep.subr.bf16.mxu0 %v3693_v12  ;;  %3860 = vmatprep.subr.bf16.mxu1 %v3693_v12 }
  0x11   :  { %3696 = vmatpush3.bf16.msra.mxu0 %v3693_v12  ;;  %3867 = vmatpush3.bf16.msra.mxu1 %v3693_v12 }
  0x12   :  { %3698 = vmatprep.subr.bf16.mxu0 %v3697_v15  ;;  %3861 = vmatprep.subr.bf16.mxu1 %v3697_v15 }
  0x15   :  { %3700 = vmatpush3.bf16.msra.mxu0 %v3697_v15  ;;  %3868 = vmatpush3.bf16.msra.mxu1 %v3697_v15 }
  0x16   :  { %3702 = vmatprep.subr.bf16.mxu0 %v3701_v18  ;;  %3862 = vmatprep.subr.bf16.mxu1 %v3701_v18 }
  0x19   :  { %3704 = vmatpush3.bf16.msra.mxu0 %v3701_v18  ;;  %3869 = vmatpush3.bf16.msra.mxu1 %v3701_v18 }
  0x1a   :  { %3366 = vmatprep.subr.msk.mxu0 %vm629_vm1, %v195_v19  ;;  %3863 = vmatprep.subr.msk.mxu1 %vm629_vm1, %v195_v19 }
  0x1b   :  { %16 = vsyncpa [#allocation4], 0  ;;  %v41_v21 = vld [vmem:[%s5798_s1 + $0x10] sm:$0xff]  ;;  %v42_v22 = vld [vmem:[%s5798_s1 + $0x18] sm:$0xff]  ;;  %v3920_v15 = vmov 0   ;;  %vm1838_vm2 = vcmask 261120  }
  0x1c   :  { %v43_v23 = vld [vmem:[%s5798_s1 + $0x20] sm:$0xff]  ;;  %v44_v24 = vld [vmem:[%s5798_s1 + $0x28] sm:$0xff]  ;;  %v45_v25 = vld [vmem:[%s5798_s1 + $0x30] sm:$0xff]  ;;  %3894 = vset.pattern.permute.xlu1 %v3920_v15  ;;  %3893 = vset.pattern.permute.xlu0 %v3920_v15  ;;  %vm2095_vm3 = vcmask 286720   ;;  %s3923_s21 = smov 32   ;;  %s3924_s22 = smov 104  }
  0x1d   :  { %3367 = vmatpush3.msk.msra.mxu0 %vm629_vm1, %v195_v19  ;;  %3870 = vmatpush3.msk.msra.mxu1 %vm629_vm1, %v195_v19  ;;  %v46_v26 = vld [vmem:[%s5798_s1 + $0x38] sm:$0xff]  ;;  %v47_v27 = vld [vmem:[%s5798_s1 + $0x40] sm:$0xff]  ;;  %v48_v28 = vld [vmem:[%s5798_s1 + $0x48] sm:$0xff]  ;;  %s3925_s23 = smov 92   ;;  %s3926_s24 = smov 68   ;;  %vm2110_vm4 = vcmask 581920  }
  0x1e   :  { %3369 = vmatmul.mubr.msk.f32.vlgmr.msra.gmra.mrb[0].mxu0 %vm196_vm0, %v40_v20  ;;  %v49_v29 = vld [vmem:[%s5798_s1 + $0x50] sm:$0xff]  ;;  %v50_v30 = vld [vmem:[%s5798_s1 + $0x58] sm:$0xff]  ;;  %v51_v31 = vld [vmem:[%s5798_s1 + $0x60] sm:$0xff]  ;;  %s3927_s25 = smov 72   ;;  %s3928_s26 = smov 36   ;;  %vm2116_vm5 = vcmask 877120  }
  0x1f   :  { %3371 = vmatprep.mubr.msk.f32.mxu0 %vm196_vm0, %v41_v21  ;;  %v52_v32 = vld [vmem:[%s5798_s1 + $0x68] sm:$0xff]  ;;  %v53_v33 = vld [vmem:[%s5798_s1 + $0x70] sm:$0xff]  ;;  %v54_v34 = vld [vmem:[%s5798_s1 + $0x78] sm:$0xff]  ;;  %s3929_s27 = smov 16   ;;  %s3930_s28 = smov 108   ;;  %vm2126_vm6 = vcmask 1041248  }
  0x20   :  { %v153_v35 = vld [vmem:[%s5798_s1 + $0x390] sm:$0xff]  ;;  %v55_v36 = vld [vmem:[%s5798_s1 + $0x80] sm:$0xff]  ;;  %v154_v37 = vld [vmem:[%s5798_s1 + $0x398] sm:$0xff]  ;;  %s3931_s15 = smov 120   ;;  %s3934_s16 = smov 52   ;;  %vm2127_vm7 = vcmask 124930  }
  0x21   :  { %3539 = vmatprep.mubr.msk.f32.mxu1 %vm196_vm0, %v153_v35  ;;  %v56_v38 = vld [vmem:[%s5798_s1 + $0x88] sm:$0xff]  ;;  %v155_v39 = vld [vmem:[%s5798_s1 + $0x3a0] sm:$0xff]  ;;  %v57_v40 = vld [vmem:[%s5798_s1 + $0x90] sm:$0xff]  ;;  %s3935_s17 = smov 84   ;;  %vm2123_vm8 = vcmask 883712   ;;  %vm2141_vm10 = vcmask 417920  }
  0x22   :  { %3372 = vmatmul.mubr.msk.f32.gmra.mrb[2].mxu0 %vm196_vm0, %v42_v22  ;;  %3540 = vmatmul.mubr.msk.f32.vlgmr.msra.gmra.mrb[0].mxu1 %vm196_vm0, %v154_v37  ;;  %v156_v41 = vld [vmem:[%s5798_s1 + $0x3a8] sm:$0xff]  ;;  %v58_v42 = vld [vmem:[%s5798_s1 + $0x98] sm:$0xff]  ;;  %v157_v43 = vld [vmem:[%s5798_s1 + $0x3b0] sm:$0xff]  ;;  %vm2257_vm11 = vcmask 588800   ;;  %vm2164_vm12 = vcmask 1041376   ;;  %vm2165_vm13 = vcmask 256002  }
  0x23   :  { %3374 = vmatprep.mubr.msk.f32.mxu0 %vm196_vm0, %v43_v23  ;;  %3542 = vmatprep.mubr.msk.f32.mxu1 %vm196_vm0, %v155_v39  ;;  %v59_v44 = vld [vmem:[%s5798_s1 + $0xa0] sm:$0xff]  ;;  %v158_v45 = vld [vmem:[%s5798_s1 + $0x3b8] sm:$0xff]  ;;  %v60_v46 = vld [vmem:[%s5798_s1 + $0xa8] sm:$0xff]  ;;  %vm2148_vm14 = vcmask 713120   ;;  %vm2154_vm15 = vcmask 1008320  }
  0x24   :  { %v159_v47 = vld [vmem:[%s5798_s1 + $0x3c0] sm:$0xff]  ;;  %v61_v48 = vld [vmem:[%s5798_s1 + $0xb0] sm:$0xff]  ;;  %v160_v49 = vld [vmem:[%s5798_s1 + $0x3c8] sm:$0xff] }
  0x25   :  { %v62_v50 = vld [vmem:[%s5798_s1 + $0xb8] sm:$0xff]  ;;  %v161_v51 = vld [vmem:[%s5798_s1 + $0x3d0] sm:$0xff]  ;;  %v63_v52 = vld [vmem:[%s5798_s1 + $0xc0] sm:$0xff] }
  0x26   :  { %3375 = vmatmul.mubr.msk.f32.gmra.mrb[4].mxu0 %vm196_vm0, %v44_v24  ;;  %3543 = vmatmul.mubr.msk.f32.gmra.mrb[2].mxu1 %vm196_vm0, %v156_v41  ;;  %v162_v53 = vld [vmem:[%s5798_s1 + $0x3d8] sm:$0xff]  ;;  %v64_v54 = vld [vmem:[%s5798_s1 + $0xc8] sm:$0xff]  ;;  %v163_v55 = vld [vmem:[%s5798_s1 + $0x3e0] sm:$0xff] }
  0x27   :  { %3377 = vmatprep.mubr.msk.f32.mxu0 %vm196_vm0, %v45_v25  ;;  %3545 = vmatprep.mubr.msk.f32.mxu1 %vm196_vm0, %v157_v43  ;;  %v65_v56 = vld [vmem:[%s5798_s1 + $0xd0] sm:$0xff]  ;;  %v164_v57 = vld [vmem:[%s5798_s1 + $0x3e8] sm:$0xff]  ;;  %v66_v58 = vld [vmem:[%s5798_s1 + $0xd8] sm:$0xff] }
  0x28   :  { %v165_v59 = vld [vmem:[%s5798_s1 + $0x3f0] sm:$0xff]  ;;  %v67_v60 = vld [vmem:[%s5798_s1 + $0xe0] sm:$0xff]  ;;  %v166_v61 = vld [vmem:[%s5798_s1 + $0x3f8] sm:$0xff] }
  0x29   :  { %v68_v62 = vld [vmem:[%s5798_s1 + $0xe8] sm:$0xff]  ;;  %v167_v63 = vld [vmem:[%s5798_s1 + $0x400] sm:$0xff]  ;;  %v69_v0 = vld [vmem:[%s5798_s1 + $0xf0] sm:$0xff] }
  0x2a   :  { %3378 = vmatmul.mubr.msk.f32.gmra.mrb[6].mxu0 %vm196_vm0, %v46_v26  ;;  %3546 = vmatmul.mubr.msk.f32.gmra.mrb[4].mxu1 %vm196_vm0, %v158_v45  ;;  %v168_v1 = vld [vmem:[%s5798_s1 + $0x408] sm:$0xff]  ;;  %v70_v2 = vld [vmem:[%s5798_s1 + $0xf8] sm:$0xff]  ;;  %v169_v3 = vld [vmem:[%s5798_s1 + $0x410] sm:$0xff] }
  0x2b   :  { %3380 = vmatprep.mubr.msk.f32.mxu0 %vm196_vm0, %v47_v27  ;;  %3548 = vmatprep.mubr.msk.f32.mxu1 %vm196_vm0, %v159_v47  ;;  %v71_v4 = vld [vmem:[%s5798_s1 + $0x100] sm:$0xff]  ;;  %v170_v5 = vld [vmem:[%s5798_s1 + $0x418] sm:$0xff]  ;;  %v72_v6 = vld [vmem:[%s5798_s1 + $0x108] sm:$0xff] }
  0x2c   :  { %v171_v7 = vld [vmem:[%s5798_s1 + $0x420] sm:$0xff]  ;;  %v73_v8 = vld [vmem:[%s5798_s1 + $0x110] sm:$0xff]  ;;  %v172_v9 = vld [vmem:[%s5798_s1 + $0x428] sm:$0xff] }
  0x2d   :  { %v74_v10 = vld [vmem:[%s5798_s1 + $0x118] sm:$0xff]  ;;  %v173_v11 = vld [vmem:[%s5798_s1 + $0x430] sm:$0xff]  ;;  %v75_v12 = vld [vmem:[%s5798_s1 + $0x120] sm:$0xff] }
  0x2e   :  { %3381 = vmatmul.mubr.msk.f32.gmra.mrb[8].mxu0 %vm196_vm0, %v48_v28  ;;  %3549 = vmatmul.mubr.msk.f32.gmra.mrb[6].mxu1 %vm196_vm0, %v160_v49  ;;  %v174_v13 = vld [vmem:[%s5798_s1 + $0x438] sm:$0xff]  ;;  %v76_v14 = vld [vmem:[%s5798_s1 + $0x128] sm:$0xff]  ;;  %v175_v16 = vld [vmem:[%s5798_s1 + $0x440] sm:$0xff] }
  0x2f   :  { %3383 = vmatprep.mubr.msk.f32.mxu0 %vm196_vm0, %v49_v29  ;;  %3551 = vmatprep.mubr.msk.f32.mxu1 %vm196_vm0, %v161_v51  ;;  %v1526_v17 = vld [vmem:[%s5799_s2] sm:$0xff]  ;;  %v77_v18 = vld [vmem:[%s5798_s1 + $0x130] sm:$0xff]  ;;  %v176_v19 = vld [vmem:[%s5798_s1 + $0x448] sm:$0xff] }
  0x30   :  { %1564 = vperm.xlu1 %3894, %v1526_v17   ;;  %v1542_v20 = vld [vmem:[%s5799_s2 + $0x80] sm:$0xff]  ;;  %v78_v21 = vld [vmem:[%s5798_s1 + $0x138] sm:$0xff]  ;;  %v177_v22 = vld [vmem:[%s5798_s1 + $0x450] sm:$0xff] }
  0x31   :  { %1644 = vperm.xlu0 %3893, %v1542_v20   ;;  %v1527_v23 = vld [vmem:[%s5799_s2 + $0x8] sm:$0xff]  ;;  %v79_v24 = vld [vmem:[%s5798_s1 + $0x140] sm:$0xff]  ;;  %v178_v25 = vld [vmem:[%s5798_s1 + $0x458] sm:$0xff] }
  0x32   :  { %3384 = vmatmul.mubr.msk.f32.gmra.mrb[10].mxu0 %vm196_vm0, %v50_v30  ;;  %3552 = vmatmul.mubr.msk.f32.gmra.mrb[8].mxu1 %vm196_vm0, %v162_v53  ;;  %v1543_v26 = vld [vmem:[%s5799_s2 + $0x88] sm:$0xff]  ;;  %v179_v28 = vld [vmem:[%s5798_s1 + $0x460] sm:$0xff]  ;;  %v1545_v29 = vld [vmem:[%s5799_s2 + $0x98] sm:$0xff] }
  0x33   :  { %3386 = vmatprep.mubr.msk.f32.mxu0 %vm196_vm0, %v51_v31  ;;  %3554 = vmatprep.mubr.msk.f32.mxu1 %vm196_vm0, %v163_v55  ;;  %v80_v27 = vld [vmem:[%s5798_s1 + $0x148] sm:$0xff]  ;;  %v81_v30 = vld [vmem:[%s5798_s1 + $0x150] sm:$0xff]  ;;  %v182_v37 = vld [vmem:[%s5798_s1 + $0x478] sm:$0xff] }
  0x34   :  { %1569 = vperm.xlu1 %3894, %v1527_v23   ;;  %v180_v31 = vld [vmem:[%s5798_s1 + $0x468] sm:$0xff]  ;;  %v181_v35 = vld [vmem:[%s5798_s1 + $0x470] sm:$0xff]  ;;  %v86_v43 = vld [vmem:[%s5798_s1 + $0x178] sm:$0xff] }
  0x35   :  { %1649 = vperm.xlu0 %3893, %v1543_v26   ;;  %v84_v39 = vld [vmem:[%s5798_s1 + $0x168] sm:$0xff]  ;;  %v1549_v49 = vld [vmem:[%s5799_s2 + $0xb8] sm:$0xff]  ;;  %v107_v20 = vld [vmem:[%s5798_s1 + $0x220] sm:$0xff] }
  0x36   :  { %3387 = vmatmul.mubr.msk.f32.gmra.mrb[12].mxu0 %vm196_vm0, %v52_v32  ;;  %3555 = vmatmul.mubr.msk.f32.gmra.mrb[10].mxu1 %vm196_vm0, %v164_v57  ;;  %v1544_v32 = vld [vmem:[%s5799_s2 + $0x90] sm:$0xff]  ;;  %v1547_v41 = vld [vmem:[%s5799_s2 + $0xa8] sm:$0xff]  ;;  %v90_v51 = vld [vmem:[%s5798_s1 + $0x198] sm:$0xff] }
  0x37   :  { %3389 = vmatprep.mubr.msk.f32.mxu0 %vm196_vm0, %v53_v33  ;;  %3557 = vmatprep.mubr.msk.f32.mxu1 %vm196_vm0, %v165_v59  ;;  %v82_v33 = vld [vmem:[%s5798_s1 + $0x158] sm:$0xff]  ;;  %v1531_v45 = vld [vmem:[%s5799_s2 + $0x28] sm:$0xff]  ;;  %vm2128_vm9 = vmor %vm2127_vm7, %vm2126_vm6  ;;  %vm2291_vm6 = vcmask 556032   ;;  %vm2161_vm7 = vcmask 1014784  }
  0x38   :  { %1659 = vperm.xlu1 %3894, %v1545_v29   ;;  %v88_v47 = vld [vmem:[%s5798_s1 + $0x188] sm:$0xff]  ;;  %v1533_v53 = vld [vmem:[%s5799_s2 + $0x38] sm:$0xff]  ;;  %v1560_v29 = vld [vmem:[%s5799_s2 + $0x110] sm:$0xff] }
  0x39   :  { %1654 = vperm.xlu0 %3893, %v1544_v32   ;;  %v92_v55 = vld [vmem:[%s5798_s1 + $0x1a8] sm:$0xff]  ;;  %v94_v59 = vld [vmem:[%s5798_s1 + $0x1b8] sm:$0xff]  ;;  %v113_v32 = vld [vmem:[%s5798_s1 + $0x250] sm:$0xff] }
  0x3a   :  { %3390 = vmatmul.mubr.msk.f32.gmra.mrb[14].mxu0 %vm196_vm0, %v54_v34  ;;  %3558 = vmatmul.mubr.msk.f32.gmra.mrb[12].mxu1 %vm196_vm0, %v166_v61  ;;  %v83_v34 = vld [vmem:[%s5798_s1 + $0x160] sm:$0xff]  ;;  %v1551_v57 = vld [vmem:[%s5799_s2 + $0xc8] sm:$0xff]  ;;  %v1557_v17 = vld [vmem:[%s5799_s2 + $0xf8] sm:$0xff] }
  0x3b   :  { %3392 = vmatprep.mubr.msk.f32.mxu0 %vm196_vm0, %v55_v36  ;;  %3560 = vmatprep.mubr.msk.f32.mxu1 %vm196_vm0, %v167_v63  ;;  %v1529_v36 = vld [vmem:[%s5799_s2 + $0x18] sm:$0xff]  ;;  %v1535_v61 = vld [vmem:[%s5799_s2 + $0x48] sm:$0xff] }
  0x3c   :  { %1579 = vperm.xlu1 %3894, %v1529_v36   ;;  %v96_v63 = vld [vmem:[%s5798_s1 + $0x1c8] sm:$0xff]  ;;  %v115_v36 = vld [vmem:[%s5798_s1 + $0x260] sm:$0xff] }
  0x3d   :  { %v104_v15 = vld [vmem:[%s5798_s1 + $0x208] sm:$0xff] }
  0x3e   :  { %3393 = vmatmul.mubr.msk.f32.gmra.mrb[16].mxu0 %vm196_vm0, %v56_v38  ;;  %3561 = vmatmul.mubr.msk.f32.gmra.mrb[14].mxu1 %vm196_vm0, %v168_v1  ;;  %v1528_v38 = vld [vmem:[%s5799_s2 + $0x10] sm:$0xff]  ;;  %v1553_v1 = vld [vmem:[%s5799_s2 + $0xd8] sm:$0xff]  ;;  %v108_v23 = vld [vmem:[%s5798_s1 + $0x228] sm:$0xff] }
  0x3f   :  { %3395 = vmatprep.mubr.msk.f32.mxu0 %vm196_vm0, %v57_v40  ;;  %3563 = vmatprep.mubr.msk.f32.mxu1 %vm196_vm0, %v169_v3  ;;  %v85_v40 = vld [vmem:[%s5798_s1 + $0x170] sm:$0xff]  ;;  %v98_v3 = vld [vmem:[%s5798_s1 + $0x1d8] sm:$0xff]  ;;  %v1559_v26 = vld [vmem:[%s5799_s2 + $0x108] sm:$0xff] }
  0x40   :  { %1574 = vperm.xlu0 %3893, %v1528_v38   ;;  %1669 = vperm.xlu1 %3894, %v1547_v41   ;;  %v117_v38 = vld [vmem:[%s5798_s1 + $0x270] sm:$0xff]  ;;  %v120_v41 = vld [vmem:[%s5798_s1 + $0x288] sm:$0xff] }
  0x42   :  { %3396 = vmatmul.mubr.msk.f32.gmra.mrb[18].mxu0 %vm196_vm0, %v58_v42  ;;  %3564 = vmatmul.mubr.msk.f32.gmra.mrb[16].mxu1 %vm196_vm0, %v170_v5  ;;  %v1546_v42 = vld [vmem:[%s5799_s2 + $0xa0] sm:$0xff]  ;;  %v1537_v5 = vld [vmem:[%s5799_s2 + $0x58] sm:$0xff] }
  0x43   :  { %3398 = vmatprep.mubr.msk.f32.mxu0 %vm196_vm0, %v59_v44  ;;  %3566 = vmatprep.mubr.msk.f32.mxu1 %vm196_vm0, %v171_v7  ;;  %v87_v44 = vld [vmem:[%s5798_s1 + $0x180] sm:$0xff]  ;;  %v100_v7 = vld [vmem:[%s5798_s1 + $0x1e8] sm:$0xff] }
  0x44   :  { %1664 = vperm.xlu0 %3893, %v1546_v42   ;;  %1589 = vperm.xlu1 %3894, %v1531_v45   ;;  %v121_v42 = vld [vmem:[%s5798_s1 + $0x290] sm:$0xff]  ;;  %v124_v45 = vld [vmem:[%s5798_s1 + $0x2a8] sm:$0xff] }
  0x46   :  { %3399 = vmatmul.mubr.msk.f32.gmra.mrb[20].mxu0 %vm196_vm0, %v60_v46  ;;  %3567 = vmatmul.mubr.msk.f32.gmra.mrb[18].mxu1 %vm196_vm0, %v172_v9  ;;  %v1530_v46 = vld [vmem:[%s5799_s2 + $0x20] sm:$0xff]  ;;  %v1555_v9 = vld [vmem:[%s5799_s2 + $0xe8] sm:$0xff] }
  0x47   :  { %3401 = vmatprep.mubr.msk.f32.mxu0 %vm196_vm0, %v61_v48  ;;  %3569 = vmatprep.mubr.msk.f32.mxu1 %vm196_vm0, %v173_v11  ;;  %v89_v48 = vld [vmem:[%s5798_s1 + $0x190] sm:$0xff]  ;;  %v102_v11 = vld [vmem:[%s5798_s1 + $0x1f8] sm:$0xff] }
  0x48   :  { %1584 = vperm.xlu0 %3893, %v1530_v46   ;;  %1679 = vperm.xlu1 %3894, %v1549_v49   ;;  %v125_v46 = vld [vmem:[%s5798_s1 + $0x2b0] sm:$0xff]  ;;  %v128_v49 = vld [vmem:[%s5798_s1 + $0x2c8] sm:$0xff] }
  0x4a   :  { %3402 = vmatmul.mubr.msk.f32.gmra.mrb[22].mxu0 %vm196_vm0, %v62_v50  ;;  %3570 = vmatmul.mubr.msk.f32.gmra.mrb[20].mxu1 %vm196_vm0, %v174_v13  ;;  %v1548_v50 = vld [vmem:[%s5799_s2 + $0xb0] sm:$0xff]  ;;  %v1539_v13 = vld [vmem:[%s5799_s2 + $0x68] sm:$0xff] }
  0x4b   :  { %3404 = vmatprep.mubr.msk.f32.mxu0 %vm196_vm0, %v63_v52  ;;  %3572 = vmatprep.mubr.msk.f32.mxu1 %vm196_vm0, %v175_v16  ;;  %v91_v52 = vld [vmem:[%s5798_s1 + $0x1a0] sm:$0xff]  ;;  %v105_v16 = vld [vmem:[%s5798_s1 + $0x210] sm:$0xff] }
  0x4c   :  { %1674 = vperm.xlu0 %3893, %v1548_v50   ;;  %1599 = vperm.xlu1 %3894, %v1533_v53   ;;  %v129_v50 = vld [vmem:[%s5798_s1 + $0x2d0] sm:$0xff]  ;;  %v132_v53 = vld [vmem:[%s5798_s1 + $0x2e8] sm:$0xff] }
  0x4e   :  { %3405 = vmatmul.mubr.msk.f32.gmra.mrb[24].mxu0 %vm196_vm0, %v64_v54  ;;  %3573 = vmatmul.mubr.msk.f32.gmra.mrb[22].mxu1 %vm196_vm0, %v176_v19  ;;  %v1532_v54 = vld [vmem:[%s5799_s2 + $0x30] sm:$0xff]  ;;  %v106_v19 = vld [vmem:[%s5798_s1 + $0x218] sm:$0xff] }
  0x4f   :  { %3407 = vmatprep.mubr.msk.f32.mxu0 %vm196_vm0, %v65_v56  ;;  %3575 = vmatprep.mubr.msk.f32.mxu1 %vm196_vm0, %v177_v22  ;;  %v93_v56 = vld [vmem:[%s5798_s1 + $0x1b0] sm:$0xff] }
  0x50   :  { %1594 = vperm.xlu0 %3893, %v1532_v54   ;;  %1689 = vperm.xlu1 %3894, %v1551_v57   ;;  %v1540_v22 = vld [vmem:[%s5799_s2 + $0x70] sm:$0xff]  ;;  %v136_v57 = vld [vmem:[%s5798_s1 + $0x308] sm:$0xff] }
  0x51   :  { %v133_v54 = vld [vmem:[%s5798_s1 + $0x2f0] sm:$0xff] }
  0x52   :  { %3408 = vmatmul.mubr.msk.f32.gmra.mrb[26].mxu0 %vm196_vm0, %v66_v58  ;;  %3576 = vmatmul.mubr.msk.f32.gmra.mrb[24].mxu1 %vm196_vm0, %v178_v25  ;;  %v1550_v58 = vld [vmem:[%s5799_s2 + $0xc0] sm:$0xff] }
  0x53   :  { %3410 = vmatprep.mubr.msk.f32.mxu0 %vm196_vm0, %v67_v60  ;;  %3578 = vmatprep.mubr.msk.f32.mxu1 %vm196_vm0, %v179_v28  ;;  %v95_v60 = vld [vmem:[%s5798_s1 + $0x1c0] sm:$0xff] }
  0x54   :  { %1684 = vperm.xlu0 %3893, %v1550_v58   ;;  %1609 = vperm.xlu1 %3894, %v1535_v61   ;;  %v1558_v25 = vld [vmem:[%s5799_s2 + $0x100] sm:$0xff]  ;;  %v137_v58 = vld [vmem:[%s5798_s1 + $0x310] sm:$0xff]  ;;  %v140_v61 = vld [vmem:[%s5798_s1 + $0x328] sm:$0xff] }
  0x55   :  { %v111_v28 = vld [vmem:[%s5798_s1 + $0x240] sm:$0xff] }
  0x56   :  { %3411 = vmatmul.mubr.msk.f32.gmra.mrb[28].mxu0 %vm196_vm0, %v68_v62  ;;  %3579 = vmatmul.mubr.msk.f32.gmra.mrb[26].mxu1 %vm196_vm0, %v180_v31  ;;  %v1534_v62 = vld [vmem:[%s5799_s2 + $0x40] sm:$0xff]  ;;  %v112_v31 = vld [vmem:[%s5798_s1 + $0x248] sm:$0xff] }
  0x57   :  { %3413 = vmatprep.mubr.msk.f32.mxu0 %vm196_vm0, %v69_v0  ;;  %3581 = vmatprep.mubr.msk.f32.mxu1 %vm196_vm0, %v181_v35  ;;  %v97_v0 = vld [vmem:[%s5798_s1 + $0x1d0] sm:$0xff]  ;;  %v114_v35 = vld [vmem:[%s5798_s1 + $0x258] sm:$0xff] }
  0x58   :  { %1604 = vperm.xlu0 %3893, %v1534_v62   ;;  %1699 = vperm.xlu1 %3894, %v1553_v1   ;;  %v141_v62 = vld [vmem:[%s5798_s1 + $0x330] sm:$0xff]  ;;  %v144_v1 = vld [vmem:[%s5798_s1 + $0x348] sm:$0xff] }
  0x5a   :  { %3414 = vmatmul.mubr.msk.f32.gmra.mrb[30].mxu0 %vm196_vm0, %v70_v2  ;;  %3582 = vmatmul.mubr.msk.f32.gmra.mrb[28].mxu1 %vm196_vm0, %v182_v37  ;;  %v1552_v2 = vld [vmem:[%s5799_s2 + $0xd0] sm:$0xff]  ;;  %v116_v37 = vld [vmem:[%s5798_s1 + $0x268] sm:$0xff] }
  0x5b   :  { %3416 = vmatprep.mubr.msk.f32.mxu0 %vm196_vm0, %v71_v4  ;;  %v99_v4 = vld [vmem:[%s5798_s1 + $0x1e0] sm:$0xff] }
  0x5c   :  { %1694 = vperm.xlu0 %3893, %v1552_v2   ;;  %1619 = vperm.xlu1 %3894, %v1537_v5   ;;  %v145_v2 = vld [vmem:[%s5798_s1 + $0x350] sm:$0xff] }
  0x5e   :  { %3417 = vmatmul.mubr.msk.f32.gmra.mrb[32].mxu0 %vm196_vm0, %v72_v6  ;;  %v1536_v6 = vld [vmem:[%s5799_s2 + $0x50] sm:$0xff] }
  0x5f   :  { %3419 = vmatprep.mubr.msk.f32.mxu0 %vm196_vm0, %v73_v8  ;;  %v101_v8 = vld [vmem:[%s5798_s1 + $0x1f0] sm:$0xff] }
  0x60   :  { %1614 = vperm.xlu0 %3893, %v1536_v6   ;;  %1709 = vperm.xlu1 %3894, %v1555_v9  }
  0x62   :  { %3420 = vmatmul.mubr.msk.f32.gmra.mrb[34].mxu0 %vm196_vm0, %v74_v10  ;;  %v1554_v10 = vld [vmem:[%s5799_s2 + $0xe0] sm:$0xff] }
  0x63   :  { %3422 = vmatprep.mubr.msk.f32.mxu0 %vm196_vm0, %v75_v12  ;;  %v103_v12 = vld [vmem:[%s5798_s1 + $0x200] sm:$0xff] }
  0x64   :  { %1704 = vperm.xlu0 %3893, %v1554_v10   ;;  %1629 = vperm.xlu1 %3894, %v1539_v13  }
  0x66   :  { %3423 = vmatmul.mubr.msk.f32.gmra.mrb[36].mxu0 %vm196_vm0, %v76_v14  ;;  %v1538_v14 = vld [vmem:[%s5799_s2 + $0x60] sm:$0xff] }
  0x67   :  { %3425 = vmatprep.mubr.msk.f32.mxu0 %vm196_vm0, %v77_v18  ;;  %v1556_v18 = vld [vmem:[%s5799_s2 + $0xf0] sm:$0xff] }
  0x68   :  { %1624 = vperm.xlu0 %3893, %v1538_v14   ;;  %1719 = vperm.xlu1 %3894, %v1557_v17  }
  0x6a   :  { %3426 = vmatmul.mubr.msk.f32.gmra.mrb[38].mxu0 %vm196_vm0, %v78_v21  ;;  %v1541_v21 = vld [vmem:[%s5799_s2 + $0x78] sm:$0xff] }
  0x6b   :  { %3428 = vmatprep.mubr.msk.f32.mxu0 %vm196_vm0, %v79_v24  ;;  %v109_v24 = vld [vmem:[%s5798_s1 + $0x230] sm:$0xff] }
  0x6c   :  { %1714 = vperm.xlu0 %3893, %v1556_v18   ;;  %1639 = vperm.xlu1 %3894, %v1541_v21  }
  0x6e   :  { %3429 = vmatmul.mubr.msk.f32.gmra.mrb[40].mxu0 %vm196_vm0, %v80_v27  ;;  %v110_v27 = vld [vmem:[%s5798_s1 + $0x238] sm:$0xff] }
  0x6f   :  { %3431 = vmatprep.mubr.msk.f32.mxu0 %vm196_vm0, %v81_v30  ;;  %v1561_v30 = vld [vmem:[%s5799_s2 + $0x118] sm:$0xff] }
  0x70   :  { %1634 = vperm.xlu0 %3893, %v1540_v22   ;;  %1729 = vperm.xlu1 %3894, %v1559_v26  }
  0x72   :  { %3432 = vmatmul.mubr.msk.f32.gmra.mrb[42].mxu0 %vm196_vm0, %v82_v33  ;;  %v2079_v33 = vld [vmem:[%s5801_s4] sm:$0xff] }
  0x73   :  { %3434 = vmatprep.mubr.msk.f32.mxu0 %vm196_vm0, %v83_v34  ;;  %v2080_v34 = vld [vmem:[%s5801_s4 + $0x8] sm:$0xff]  ;;  %s3933_s4 = smov 12  }
  0x74   :  { %1724 = vperm.xlu0 %3893, %v1558_v25   ;;  %1739 = vperm.xlu1 %3894, %v1561_v30  }
  0x76   :  { %3435 = vmatmul.mubr.msk.f32.gmra.mrb[44].mxu0 %vm196_vm0, %v84_v39  ;;  %v118_v39 = vld [vmem:[%s5798_s1 + $0x278] sm:$0xff] }
  0x77   :  { %3437 = vmatprep.mubr.msk.f32.mxu0 %vm196_vm0, %v85_v40  ;;  %v119_v40 = vld [vmem:[%s5798_s1 + $0x280] sm:$0xff] }
  0x78   :  { %1734 = vperm.xlu0 %3893, %v1560_v29   ;;  %2088 = vperm.xlu1 %3894, %v2080_v34  }
  0x7a   :  { %3438 = vmatmul.mubr.msk.f32.gmra.mrb[46].mxu0 %vm196_vm0, %v86_v43  ;;  %v122_v43 = vld [vmem:[%s5798_s1 + $0x298] sm:$0xff] }
  0x7b   :  { %3440 = vmatprep.mubr.msk.f32.mxu0 %vm196_vm0, %v87_v44  ;;  %v123_v44 = vld [vmem:[%s5798_s1 + $0x2a0] sm:$0xff] }
  0x7c   :  { %2083 = vperm.xlu0 %3893, %v2079_v33  }
  0x7e   :  { %3441 = vmatmul.mubr.msk.f32.gmra.mrb[48].mxu0 %vm196_vm0, %v88_v47  ;;  %v126_v47 = vld [vmem:[%s5798_s1 + $0x2b8] sm:$0xff] }
  0x7f   :  { %3443 = vmatprep.mubr.msk.f32.mxu0 %vm196_vm0, %v89_v48  ;;  %v127_v48 = vld [vmem:[%s5798_s1 + $0x2c0] sm:$0xff] }
  0x82   :  { %3444 = vmatmul.mubr.msk.f32.gmra.mrb[50].mxu0 %vm196_vm0, %v90_v51  ;;  %v130_v51 = vld [vmem:[%s5798_s1 + $0x2d8] sm:$0xff] }
  0x83   :  { %3446 = vmatprep.mubr.msk.f32.mxu0 %vm196_vm0, %v91_v52  ;;  %v131_v52 = vld [vmem:[%s5798_s1 + $0x2e0] sm:$0xff] }
  0x86   :  { %3447 = vmatmul.mubr.msk.f32.gmra.mrb[52].mxu0 %vm196_vm0, %v92_v55  ;;  %v134_v55 = vld [vmem:[%s5798_s1 + $0x2f8] sm:$0xff] }
  0x87   :  { %3449 = vmatprep.mubr.msk.f32.mxu0 %vm196_vm0, %v93_v56  ;;  %v135_v56 = vld [vmem:[%s5798_s1 + $0x300] sm:$0xff] }
  0x8a   :  { %3450 = vmatmul.mubr.msk.f32.gmra.mrb[54].mxu0 %vm196_vm0, %v94_v59  ;;  %v138_v59 = vld [vmem:[%s5798_s1 + $0x318] sm:$0xff] }
  0x8b   :  { %3452 = vmatprep.mubr.msk.f32.mxu0 %vm196_vm0, %v95_v60  ;;  %v139_v60 = vld [vmem:[%s5798_s1 + $0x320] sm:$0xff] }
  0x8e   :  { %3453 = vmatmul.mubr.msk.f32.gmra.mrb[56].mxu0 %vm196_vm0, %v96_v63  ;;  %v142_v63 = vld [vmem:[%s5798_s1 + $0x338] sm:$0xff] }
  0x8f   :  { %3455 = vmatprep.mubr.msk.f32.mxu0 %vm196_vm0, %v97_v0  ;;  %v143_v0 = vld [vmem:[%s5798_s1 + $0x340] sm:$0xff] }
  0x92   :  { %3456 = vmatmul.mubr.msk.f32.gmra.mrb[58].mxu0 %vm196_vm0, %v98_v3  ;;  %v146_v3 = vld [vmem:[%s5798_s1 + $0x358] sm:$0xff] }
  0x93   :  { %3458 = vmatprep.mubr.msk.f32.mxu0 %vm196_vm0, %v99_v4  ;;  %v147_v4 = vld [vmem:[%s5798_s1 + $0x360] sm:$0xff] }
  0x96   :  { %3459 = vmatmul.mubr.msk.f32.gmra.mrb[60].mxu0 %vm196_vm0, %v100_v7  ;;  %v148_v7 = vld [vmem:[%s5798_s1 + $0x368] sm:$0xff] }
  0x97   :  { %3461 = vmatprep.mubr.msk.f32.mxu0 %vm196_vm0, %v101_v8  ;;  %v149_v8 = vld [vmem:[%s5798_s1 + $0x370] sm:$0xff] }
  0x9a   :  { %3462 = vmatmul.mubr.msk.f32.gmra.mrb[62].mxu0 %vm196_vm0, %v102_v11  ;;  %v150_v11 = vld [vmem:[%s5798_s1 + $0x378] sm:$0xff] }
  0x9b   :  { %3464 = vmatprep.mubr.msk.f32.mxu0 %vm196_vm0, %v103_v12  ;;  %v151_v12 = vld [vmem:[%s5798_s1 + $0x380] sm:$0xff] }
  0x9e   :  { %3465 = vmatmul.mubr.msk.f32.gmra.mrb[64].mxu0 %vm196_vm0, %v104_v15  ;;  %v152_v15 = vld [vmem:[%s5798_s1 + $0x388] sm:$0xff]  ;;  %s3936_s1 = smov 48  }
  0x9f   :  { %3467 = vmatprep.mubr.msk.f32.mxu0 %vm196_vm0, %v105_v16 }
  0xa2   :  { %3468 = vmatmul.mubr.msk.f32.gmra.mrb[66].mxu0 %vm196_vm0, %v106_v19 }
  0xa3   :  { %3470 = vmatprep.mubr.msk.f32.mxu0 %vm196_vm0, %v107_v20 }
  0xa6   :  { %3471 = vmatmul.mubr.msk.f32.gmra.mrb[68].mxu0 %vm196_vm0, %v108_v23 }
  0xa7   :  { %3473 = vmatprep.mubr.msk.f32.mxu0 %vm196_vm0, %v109_v24 }
  0xaa   :  { %3474 = vmatmul.mubr.msk.f32.gmra.mrb[70].mxu0 %vm196_vm0, %v110_v27 }
  0xab   :  { %3476 = vmatprep.mubr.msk.f32.mxu0 %vm196_vm0, %v111_v28 }
  0xae   :  { %3477 = vmatmul.mubr.msk.f32.gmra.mrb[72].mxu0 %vm196_vm0, %v112_v31 }
  0xaf   :  { %3479 = vmatprep.mubr.msk.f32.mxu0 %vm196_vm0, %v113_v32 }
  0xb2   :  { %3480 = vmatmul.mubr.msk.f32.gmra.mrb[74].mxu0 %vm196_vm0, %v114_v35 }
  0xb3   :  { %3482 = vmatprep.mubr.msk.f32.mxu0 %vm196_vm0, %v115_v36 }
  0xb6   :  { %3483 = vmatmul.mubr.msk.f32.gmra.mrb[76].mxu0 %vm196_vm0, %v116_v37 }
  0xb7   :  { %3485 = vmatprep.mubr.msk.f32.mxu0 %vm196_vm0, %v117_v38 }
  0xba   :  { %3486 = vmatmul.mubr.msk.f32.gmra.mrb[78].mxu0 %vm196_vm0, %v118_v39 }
  0xbb   :  { %3488 = vmatprep.mubr.msk.f32.mxu0 %vm196_vm0, %v119_v40 }
  0xbe   :  { %3489 = vmatmul.mubr.msk.f32.gmra.mrb[80].mxu0 %vm196_vm0, %v120_v41 }
  0xbf   :  { %3491 = vmatprep.mubr.msk.f32.mxu0 %vm196_vm0, %v121_v42 }
  0xc2   :  { %3492 = vmatmul.mubr.msk.f32.gmra.mrb[82].mxu0 %vm196_vm0, %v122_v43 }
  0xc3   :  { %3494 = vmatprep.mubr.msk.f32.mxu0 %vm196_vm0, %v123_v44 }
  0xc6   :  { %3495 = vmatmul.mubr.msk.f32.gmra.mrb[84].mxu0 %vm196_vm0, %v124_v45 }
  0xc7   :  { %3497 = vmatprep.mubr.msk.f32.mxu0 %vm196_vm0, %v125_v46 }
  0xca   :  { %3498 = vmatmul.mubr.msk.f32.gmra.mrb[86].mxu0 %vm196_vm0, %v126_v47 }
  0xcb   :  { %3500 = vmatprep.mubr.msk.f32.mxu0 %vm196_vm0, %v127_v48 }
  0xce   :  { %3501 = vmatmul.mubr.msk.f32.gmra.mrb[88].mxu0 %vm196_vm0, %v128_v49 }
  0xcf   :  { %3503 = vmatprep.mubr.msk.f32.mxu0 %vm196_vm0, %v129_v50 }
  0xd2   :  { %3504 = vmatmul.mubr.msk.f32.gmra.mrb[90].mxu0 %vm196_vm0, %v130_v51 }
  0xd3   :  { %3506 = vmatprep.mubr.msk.f32.mxu0 %vm196_vm0, %v131_v52 }
  0xd6   :  { %3507 = vmatmul.mubr.msk.f32.gmra.mrb[92].mxu0 %vm196_vm0, %v132_v53 }
  0xd7   :  { %3509 = vmatprep.mubr.msk.f32.mxu0 %vm196_vm0, %v133_v54 }
  0xda   :  { %3510 = vmatmul.mubr.msk.f32.gmra.mrb[94].mxu0 %vm196_vm0, %v134_v55 }
  0xdb   :  { %3512 = vmatprep.mubr.msk.f32.mxu0 %vm196_vm0, %v135_v56 }
  0xde   :  { %3513 = vmatmul.mubr.msk.f32.gmra.mrb[96].mxu0 %vm196_vm0, %v136_v57 }
  0xdf   :  { %3515 = vmatprep.mubr.msk.f32.mxu0 %vm196_vm0, %v137_v58 }
  0xe2   :  { %3516 = vmatmul.mubr.msk.f32.gmra.mrb[98].mxu0 %vm196_vm0, %v138_v59 }
  0xe3   :  { %3518 = vmatprep.mubr.msk.f32.mxu0 %vm196_vm0, %v139_v60 }
  0xe6   :  { %3519 = vmatmul.mubr.msk.f32.gmra.mrb[100].mxu0 %vm196_vm0, %v140_v61 }
  0xe7   :  { %3521 = vmatprep.mubr.msk.f32.mxu0 %vm196_vm0, %v141_v62 }
  0xea   :  { %3522 = vmatmul.mubr.msk.f32.gmra.mrb[102].mxu0 %vm196_vm0, %v142_v63 }
  0xeb   :  { %3524 = vmatprep.mubr.msk.f32.mxu0 %vm196_vm0, %v143_v0 }
  0xee   :  { %3525 = vmatmul.mubr.msk.f32.gmra.mrb[104].mxu0 %vm196_vm0, %v144_v1 }
  0xef   :  { %3527 = vmatprep.mubr.msk.f32.mxu0 %vm196_vm0, %v145_v2 }
  0xf1   :  { %v4713_v5 = vpop.f32.mrb[0].mxu0 }
  0xf2   :  { %5850 = vst [vmem:[#allocation6_spill] sm:$0xff] %v4713_v5  ;;  %v4715_v6 = vpop.f32.mrb[1].mxu0  ;;  %3528 = vmatmul.mubr.msk.f32.gmra.mrb[106].mxu0 %vm196_vm0, %v146_v3 }
  0xf3   :  { %5851 = vst [vmem:[#allocation7_spill] sm:$0xff] %v4715_v6  ;;  %3530 = vmatprep.mubr.msk.f32.mxu0 %vm196_vm0, %v147_v4 }
  0xf5   :  { %v4725_v9 = vpop.f32.mrb[2].mxu0  ;;  %v4767_v26 = vpop.f32.mrb[0].mxu1 }
  0xf6   :  { %5852 = vst [vmem:[#allocation8_spill] sm:$0xff] %v4725_v9  ;;  %v4727_v10 = vpop.f32.mrb[3].mxu0  ;;  %3531 = vmatmul.mubr.msk.f32.gmra.mrb[108].mxu0 %vm196_vm0, %v148_v7  ;;  %v4769_v27 = vpop.f32.mrb[1].mxu1 }
  0xf7   :  { %5853 = vst [vmem:[#allocation9_spill] sm:$0xff] %v4727_v10  ;;  %3533 = vmatprep.mubr.msk.f32.mxu0 %vm196_vm0, %v149_v8 }
  0xf9   :  { %v4737_v13 = vpop.f32.mrb[4].mxu0  ;;  %v4775_v30 = vpop.f32.mrb[2].mxu1 }
  0xfa   :  { %5854 = vst [vmem:[#allocation10_spill] sm:$0xff] %v4737_v13  ;;  %v4739_v14 = vpop.f32.mrb[5].mxu0  ;;  %3534 = vmatmul.mubr.msk.f32.gmra.mrb[110].mxu0 %vm196_vm0, %v150_v11  ;;  %v4777_v31 = vpop.f32.mrb[3].mxu1 }
  0xfb   :  { %5855 = vst [vmem:[#allocation11_spill] sm:$0xff] %v4739_v14  ;;  %3536 = vmatprep.mubr.msk.f32.mxu0 %vm196_vm0, %v151_v12 }
  0xfd   :  { %v4746_v16 = vpop.f32.mrb[6].mxu0  ;;  %v4783_v34 = vpop.f32.mrb[4].mxu1 }
  0xfe   :  { %v4748_v17 = vpop.f32.mrb[7].mxu0  ;;  %3537 = vmatmul.mubr.msk.f32.gmra.mrb[112].mxu0 %vm196_vm0, %v152_v15  ;;  %v4785_v35 = vpop.f32.mrb[5].mxu1  ;;  %vm2276_vm0 = vcmask 719872  }
 0x101   :  { %v4751_v18 = vpop.f32.mrb[8].mxu0  ;;  %v4791_v38 = vpop.f32.mrb[6].mxu1 }
 0x102   :  { %v4753_v19 = vpop.f32.mrb[9].mxu0  ;;  %v4793_v39 = vpop.f32.mrb[7].mxu1 }
 0x105   :  { %v4755_v20 = vpop.f32.mrb[10].mxu0  ;;  %v4799_v42 = vpop.f32.mrb[8].mxu1 }
 0x106   :  { %v4757_v21 = vpop.f32.mrb[11].mxu0  ;;  %v4801_v43 = vpop.f32.mrb[9].mxu1 }
 0x109   :  { %v4759_v22 = vpop.f32.mrb[12].mxu0  ;;  %v4807_v46 = vpop.f32.mrb[10].mxu1 }
 0x10a   :  { %v4761_v23 = vpop.f32.mrb[13].mxu0  ;;  %v4809_v47 = vpop.f32.mrb[11].mxu1 }
 0x10d   :  { %v4763_v24 = vpop.f32.mrb[14].mxu0  ;;  %v4813_v49 = vpop.f32.mrb[12].mxu1 }
 0x10e   :  { %v4765_v25 = vpop.f32.mrb[15].mxu0  ;;  %5859 = vst [vmem:[#allocation15_spill] sm:$0xff] %v4813_v49  ;;  %v4817_v51 = vpop.f32.mrb[13].mxu1 }
 0x10f   :  { %5861 = vst [vmem:[#allocation17_spill] sm:$0xff] %v4817_v51 }
 0x111   :  { %v4771_v28 = vpop.f32.mrb[16].mxu0  ;;  %v4821_v53 = vpop.f32.mrb[14].mxu1 }
 0x112   :  { %v4773_v29 = vpop.f32.mrb[17].mxu0  ;;  %5863 = vst [vmem:[#allocation19_spill] sm:$0xff] %v4821_v53  ;;  %v4825_v55 = vpop.f32.mrb[15].mxu1 }
 0x113   :  { %5865 = vst [vmem:[#allocation21_spill] sm:$0xff] %v4825_v55 }
 0x115   :  { %v4779_v32 = vpop.f32.mrb[18].mxu0  ;;  %v4829_v57 = vpop.f32.mrb[16].mxu1 }
 0x116   :  { %v4781_v33 = vpop.f32.mrb[19].mxu0  ;;  %5867 = vst [vmem:[#allocation23_spill] sm:$0xff] %v4829_v57  ;;  %v4833_v59 = vpop.f32.mrb[17].mxu1 }
 0x117   :  { %5869 = vst [vmem:[#allocation25_spill] sm:$0xff] %v4833_v59 }
 0x119   :  { %v4787_v36 = vpop.f32.mrb[20].mxu0  ;;  %v4837_v61 = vpop.f32.mrb[18].mxu1 }
 0x11a   :  { %v4789_v37 = vpop.f32.mrb[21].mxu0  ;;  %5871 = vst [vmem:[#allocation27_spill] sm:$0xff] %v4837_v61  ;;  %v4841_v63 = vpop.f32.mrb[19].mxu1 }
 0x11b   :  { %5873 = vst [vmem:[#allocation29_spill] sm:$0xff] %v4841_v63 }
 0x11d   :  { %v4795_v40 = vpop.f32.mrb[22].mxu0  ;;  %v4845_v1 = vpop.f32.mrb[20].mxu1 }
 0x11e   :  { %v4797_v41 = vpop.f32.mrb[23].mxu0  ;;  %5875 = vst [vmem:[#allocation31_spill] sm:$0xff] %v4845_v1  ;;  %v4849_v3 = vpop.f32.mrb[21].mxu1 }
 0x11f   :  { %5856 = vst [vmem:[#allocation12_spill] sm:$0xff] %v4797_v41  ;;  %5877 = vst [vmem:[#allocation33_spill] sm:$0xff] %v4849_v3 }
 0x121   :  { %v4803_v44 = vpop.f32.mrb[24].mxu0  ;;  %v4853_v7 = vpop.f32.mrb[22].mxu1 }
 0x122   :  { %5857 = vst [vmem:[#allocation13_spill] sm:$0xff] %v4803_v44  ;;  %v4805_v45 = vpop.f32.mrb[25].mxu0  ;;  %5879 = vst [vmem:[#allocation35_spill] sm:$0xff] %v4853_v7  ;;  %v4859_v12 = vpop.f32.mrb[23].mxu1 }
 0x123   :  { %5881 = vst [vmem:[#allocation37_spill] sm:$0xff] %v4859_v12 }
 0x125   :  { %v4811_v48 = vpop.f32.mrb[26].mxu0  ;;  %v4865_v1 = vpop.f32.mrb[24].mxu1 }
 0x126   :  { %5858 = vst [vmem:[#allocation14_spill] sm:$0xff] %v4811_v48  ;;  %v4815_v50 = vpop.f32.mrb[27].mxu0  ;;  %5883 = vst [vmem:[#allocation39_spill] sm:$0xff] %v4865_v1  ;;  %v4871_v7 = vpop.f32.mrb[25].mxu1 }
 0x127   :  { %5860 = vst [vmem:[#allocation16_spill] sm:$0xff] %v4815_v50  ;;  %5885 = vst [vmem:[#allocation41_spill] sm:$0xff] %v4871_v7  ;;  %v4891_v7 = vpop.permute.xlu0 %1644 }
 0x128   :  { %5891 = vst [vmem:[#allocation47_spill] sm:$0xff] %v4891_v7 }
 0x129   :  { %v4819_v52 = vpop.f32.mrb[28].mxu0  ;;  %v4877_v5 = vpop.f32.mrb[26].mxu1 }
 0x12a   :  { %5862 = vst [vmem:[#allocation18_spill] sm:$0xff] %v4819_v52  ;;  %v4823_v54 = vpop.f32.mrb[29].mxu0  ;;  %5887 = vst [vmem:[#allocation43_spill] sm:$0xff] %v4877_v5  ;;  %v4883_v6 = vpop.f32.mrb[27].mxu1 }
 0x12b   :  { %5864 = vst [vmem:[#allocation20_spill] sm:$0xff] %v4823_v54  ;;  %5889 = vst [vmem:[#allocation45_spill] sm:$0xff] %v4883_v6 }
 0x12d   :  { %v4827_v56 = vpop.f32.mrb[30].mxu0  ;;  %v4897_v10 = vpop.f32.mrb[28].mxu1 }
 0x12e   :  { %5866 = vst [vmem:[#allocation22_spill] sm:$0xff] %v4827_v56  ;;  %v4831_v58 = vpop.f32.mrb[31].mxu0  ;;  %5892 = vst [vmem:[#allocation48_spill] sm:$0xff] %v4897_v10 }
 0x12f   :  { %5868 = vst [vmem:[#allocation24_spill] sm:$0xff] %v4831_v58 }
 0x131   :  { %v4835_v60 = vpop.f32.mrb[32].mxu0 }
 0x132   :  { %5870 = vst [vmem:[#allocation26_spill] sm:$0xff] %v4835_v60  ;;  %v4839_v62 = vpop.f32.mrb[33].mxu0 }
 0x133   :  { %5872 = vst [vmem:[#allocation28_spill] sm:$0xff] %v4839_v62 }
 0x135   :  { %v4843_v0 = vpop.f32.mrb[34].mxu0 }
 0x136   :  { %5874 = vst [vmem:[#allocation30_spill] sm:$0xff] %v4843_v0  ;;  %v4847_v2 = vpop.f32.mrb[35].mxu0 }
 0x137   :  { %5876 = vst [vmem:[#allocation32_spill] sm:$0xff] %v4847_v2 }
 0x139   :  { %v4851_v4 = vpop.f32.mrb[36].mxu0 }
 0x13a   :  { %5878 = vst [vmem:[#allocation34_spill] sm:$0xff] %v4851_v4  ;;  %v4857_v11 = vpop.f32.mrb[37].mxu0 }
 0x13b   :  { %5880 = vst [vmem:[#allocation36_spill] sm:$0xff] %v4857_v11 }
 0x13d   :  { %v4863_v63 = vpop.f32.mrb[38].mxu0 }
 0x13e   :  { %5882 = vst [vmem:[#allocation38_spill] sm:$0xff] %v4863_v63  ;;  %v4869_v61 = vpop.f32.mrb[39].mxu0  ;;  %v4887_v63 = vpop.permute.xlu1 %1564 }
 0x13f   :  { %5884 = vst [vmem:[#allocation40_spill] sm:$0xff] %v4869_v61  ;;  %5890 = vst [vmem:[#allocation46_spill] sm:$0xff] %v4887_v63  ;;  %v4913_v63 = vpop.permute.xlu0 %1649 }
 0x140   :  { %5895 = vst [vmem:[#allocation51_spill] sm:$0xff] %v4913_v63 }
 0x141   :  { %v4875_v4 = vpop.f32.mrb[40].mxu0 }
 0x142   :  { %5886 = vst [vmem:[#allocation42_spill] sm:$0xff] %v4875_v4  ;;  %v4881_v11 = vpop.f32.mrb[41].mxu0  ;;  %v4901_v4 = vpop.f32.mrb[29].mxu1 }
 0x143   :  { %5888 = vst [vmem:[#allocation44_spill] sm:$0xff] %v4881_v11  ;;  %5893 = vst [vmem:[#allocation49_spill] sm:$0xff] %v4901_v4  ;;  %v4911_v8 = vpop.permute.xlu1 %1569  ;;  %v4931_v1 = vpop.permute.xlu0 %1654 }
 0x144   :  { %5894 = vst [vmem:[#allocation50_spill] sm:$0xff] %v4911_v8  ;;  %5897 = vst [vmem:[#allocation53_spill] sm:$0xff] %v4931_v1 }
 0x145   :  { %v4889_v9 = vpop.f32.mrb[42].mxu0 }
 0x146   :  { %v4895_v61 = vpop.f32.mrb[43].mxu0 }
 0x147   :  { %v4925_v5 = vpop.permute.xlu1 %1659  ;;  %v4945_v14 = vpop.permute.xlu0 %1574 }
 0x148   :  { %5896 = vst [vmem:[#allocation52_spill] sm:$0xff] %v4925_v5  ;;  %5899 = vst [vmem:[#allocation55_spill] sm:$0xff] %v4945_v14 }
 0x149   :  { %v4903_v13 = vpop.f32.mrb[44].mxu0 }
 0x14a   :  { %v4907_v11 = vpop.f32.mrb[45].mxu0 }
 0x14b   :  { %v4943_v55 = vpop.permute.xlu1 %1579  ;;  %v4963_v14 = vpop.permute.xlu0 %1664 }
 0x14c   :  { %5898 = vst [vmem:[#allocation54_spill] sm:$0xff] %v4943_v55  ;;  %5903 = vst [vmem:[#allocation59_spill] sm:$0xff] %v4963_v14 }
 0x14d   :  { %v4915_v10 = vpop.f32.mrb[46].mxu0 }
 0x14e   :  { %v4919_v4 = vpop.f32.mrb[47].mxu0 }
 0x14f   :  { %v4957_v51 = vpop.permute.xlu1 %1669  ;;  %v4977_v57 = vpop.permute.xlu0 %1584 }
 0x150   :  { %5901 = vst [vmem:[#allocation57_spill] sm:$0xff] %v4957_v51  ;;  %5907 = vst [vmem:[#allocation63_spill] sm:$0xff] %v4977_v57 }
 0x151   :  { %v4923_v3 = vpop.f32.mrb[48].mxu0 }
 0x152   :  { %v4929_v8 = vpop.f32.mrb[49].mxu0 }
 0x153   :  { %v4975_v63 = vpop.permute.xlu1 %1589  ;;  %v4995_v57 = vpop.permute.xlu0 %1674 }
 0x154   :  { %5906 = vst [vmem:[#allocation62_spill] sm:$0xff] %v4975_v63 }
 0x155   :  { %v4935_v15 = vpop.f32.mrb[50].mxu0 }
 0x156   :  { %v4939_v6 = vpop.f32.mrb[51].mxu0 }
 0x157   :  { %v1595_v41 = vpop.permute.xlu0 %1594 }
 0x159   :  { %v4947_v53 = vpop.f32.mrb[52].mxu0 }
 0x15a   :  { %v4951_v12 = vpop.f32.mrb[53].mxu0 }
 0x15d   :  { %v4955_v59 = vpop.f32.mrb[54].mxu0 }
 0x15e   :  { %5900 = vst [vmem:[#allocation56_spill] sm:$0xff] %v4955_v59  ;;  %v4961_v55 = vpop.f32.mrb[55].mxu0 }
 0x15f   :  { %5902 = vst [vmem:[#allocation58_spill] sm:$0xff] %v4961_v55 }
 0x161   :  { %v4967_v1 = vpop.f32.mrb[56].mxu0 }
 0x162   :  { %5904 = vst [vmem:[#allocation60_spill] sm:$0xff] %v4967_v1  ;;  %v4971_v5 = vpop.f32.mrb[57].mxu0  ;;  %v4989_v1 = vpop.permute.xlu1 %1679 }
 0x163   :  { %5905 = vst [vmem:[#allocation61_spill] sm:$0xff] %v4971_v5  ;;  %5911 = vst [vmem:[#allocation67_spill] sm:$0xff] %v4989_v1  ;;  %v1815_v5 = vld [vmem:[%s5800_s3 + $0x8] sm:$0xff] }
 0x164   :  { %1927 = vmatprep.mubr.f32.mxu1 %v1815_v5 }
 0x165   :  { %v4979_v59 = vpop.f32.mrb[58].mxu0 }
 0x166   :  { %5908 = vst [vmem:[#allocation64_spill] sm:$0xff] %v4979_v59  ;;  %v4983_v7 = vpop.f32.mrb[59].mxu0 }
 0x167   :  { %5909 = vst [vmem:[#allocation65_spill] sm:$0xff] %v4983_v7  ;;  %v1600_v7 = vpop.permute.xlu1 %1599 }
 0x169   :  { %v4987_v49 = vpop.f32.mrb[60].mxu0 }
 0x16a   :  { %5910 = vst [vmem:[#allocation66_spill] sm:$0xff] %v4987_v49  ;;  %v4993_v63 = vpop.f32.mrb[61].mxu0  ;;  %v5026_v49 = vpop.permute.xlu0 %1684 }
 0x16b   :  { %v5020_v1 = vpop.permute.xlu1 %1689  ;;  %5919 = vst [vmem:[#allocation75_spill] sm:$0xff] %v5026_v49 }
 0x16c   :  { %5917 = vst [vmem:[#allocation73_spill] sm:$0xff] %v5020_v1 }
 0x16d   :  { %v4999_v14 = vpop.f32.mrb[62].mxu0 }
 0x16e   :  { %5912 = vst [vmem:[#allocation68_spill] sm:$0xff] %v4999_v14  ;;  %v5003_v55 = vpop.f32.mrb[63].mxu0  ;;  %v1605_v48 = vpop.permute.xlu0 %1604 }
 0x16f   :  { %5913 = vst [vmem:[#allocation69_spill] sm:$0xff] %v5003_v55  ;;  %v1610_v54 = vpop.permute.xlu1 %1609 }
 0x171   :  { %v5007_v51 = vpop.f32.mrb[64].mxu0 }
 0x172   :  { %5914 = vst [vmem:[#allocation70_spill] sm:$0xff] %v5007_v51  ;;  %v5011_v44 = vpop.f32.mrb[65].mxu0  ;;  %v5052_v60 = vpop.permute.xlu0 %1694 }
 0x173   :  { %5915 = vst [vmem:[#allocation71_spill] sm:$0xff] %v5011_v44  ;;  %v5048_v59 = vpop.permute.xlu1 %1699  ;;  %5927 = vst [vmem:[#allocation83_spill] sm:$0xff] %v5052_v60  ;;  %v5935_v60 = vmax.f32 %v4748_v17, %v4895_v61  ;;  %v5937_v17 = vmax.f32 %v4753_v19, %v4907_v11  ;;  %v5939_v19 = vmax.f32 %v4757_v21, %v4919_v4 }
 0x174   :  { %5925 = vst [vmem:[#allocation81_spill] sm:$0xff] %v5048_v59  ;;  %v5941_v11 = vmax.f32 %v4761_v23, %v4929_v8  ;;  %v5943_v8 = vmax.f32 %v4765_v25, %v4939_v6 }
 0x175   :  { %v5018_v14 = vpop.f32.mrb[66].mxu0 }
 0x176   :  { %5916 = vst [vmem:[#allocation72_spill] sm:$0xff] %v5018_v14  ;;  %v5024_v50 = vpop.f32.mrb[67].mxu0  ;;  %v1615_v58 = vpop.permute.xlu0 %1614 }
 0x177   :  { %5918 = vst [vmem:[#allocation74_spill] sm:$0xff] %v5024_v50  ;;  %v1620_v62 = vpop.permute.xlu1 %1619 }
 0x179   :  { %v5030_v52 = vpop.f32.mrb[68].mxu0 }
 0x17a   :  { %5920 = vst [vmem:[#allocation76_spill] sm:$0xff] %v5030_v52  ;;  %v5034_v5 = vpop.f32.mrb[69].mxu0  ;;  %v5065_v2 = vpop.permute.xlu0 %1704 }
 0x17b   :  { %5921 = vst [vmem:[#allocation77_spill] sm:$0xff] %v5034_v5  ;;  %v5062_v51 = vpop.permute.xlu1 %1709  ;;  %5933 = vst [vmem:[#allocation89_spill] sm:$0xff] %v5065_v2 }
 0x17c   :  { %5932 = vst [vmem:[#allocation88_spill] sm:$0xff] %v5062_v51 }
 0x17d   :  { %v5038_v55 = vpop.f32.mrb[70].mxu0 }
 0x17e   :  { %5922 = vst [vmem:[#allocation78_spill] sm:$0xff] %v5038_v55  ;;  %v5042_v56 = vpop.f32.mrb[71].mxu0 }
 0x17f   :  { %5923 = vst [vmem:[#allocation79_spill] sm:$0xff] %v5042_v56 }
 0x181   :  { %v5046_v50 = vpop.f32.mrb[72].mxu0 }
 0x182   :  { %5924 = vst [vmem:[#allocation80_spill] sm:$0xff] %v5046_v50  ;;  %v5050_v52 = vpop.f32.mrb[73].mxu0 }
 0x183   :  { %5926 = vst [vmem:[#allocation82_spill] sm:$0xff] %v5050_v52 }
 0x185   :  { %v5054_v44 = vpop.f32.mrb[74].mxu0 }
 0x186   :  { %5928 = vst [vmem:[#allocation84_spill] sm:$0xff] %v5054_v44  ;;  %v5056_v5 = vpop.f32.mrb[75].mxu0  ;;  %v5934_v44 = vmax.f32 %v4746_v16, %v4889_v9  ;;  %v1625_v9 = vpop.permute.xlu0 %1624 }
 0x187   :  { %5929 = vst [vmem:[#allocation85_spill] sm:$0xff] %v5056_v5 }
 0x189   :  { %v5058_v14 = vpop.f32.mrb[76].mxu0 }
 0x18a   :  { %5930 = vst [vmem:[#allocation86_spill] sm:$0xff] %v5058_v14  ;;  %v5060_v55 = vpop.f32.mrb[77].mxu0 }
 0x18b   :  { %5931 = vst [vmem:[#allocation87_spill] sm:$0xff] %v5060_v55 }
 0x18d   :  { %v3487_v0 = vpop.f32.mrb[78].mxu0 }
 0x18e   :  { %v1461_v50 = vmax.f32 %v3487_v0, %v4767_v26  ;;  %v1089_v56 = vpop.f32.mrb[79].mxu0  ;;  %v1630_v0 = vpop.permute.xlu1 %1629 }
 0x18f   :  { %v1460_v52 = vmax.f32 %v1089_v56, %v4769_v27  ;;  %v5936_v27 = vmax.f32 %v4751_v18, %v4903_v13  ;;  %v5938_v13 = vmax.f32 %v4755_v20, %v4915_v10 }
 0x190   :  { %v1497_v5 = vmax.f32 %v5934_v44, %v1461_v50 }
 0x191   :  { %v1496_v14 = vmax.f32 %v5935_v60, %v1460_v52  ;;  %v3490_v59 = vpop.f32.mrb[80].mxu0 }
 0x192   :  { %v1749_v55 = vadd.f32 %v1600_v7, %v1497_v5  ;;  %v1463_v49 = vmax.f32 %v3490_v59, %v4775_v30  ;;  %v1099_v51 = vpop.f32.mrb[81].mxu0  ;;  %v5940_v7 = vmax.f32 %v4759_v22, %v4923_v3  ;;  %v5942_v22 = vmax.f32 %v4763_v24, %v4935_v15 }
 0x193   :  { %v1748_v1 = vadd.f32 %v1595_v41, %v1496_v14  ;;  %v1462_v26 = vmax.f32 %v1099_v51, %v4777_v31  ;;  %v5944_v24 = vmax.f32 %v4771_v28, %v4947_v53  ;;  %v5950_v28 = vld [vmem:[#allocation56_spill] sm:$0xff] }
 0x194   :  { %v1785_v2 = vmax.f32 %v1749_v55, 0.0  ;;  %v1499_v56 = vmax.f32 %v5936_v27, %v1463_v49  ;;  %v5951_v53 = vmax.f32 %v4779_v32, %v5950_v28  ;;  %v5958_v32 = vld [vmem:[#allocation60_spill] sm:$0xff]  ;;  %v5973_v28 = vld [vmem:[#allocation29_spill] sm:$0xff] }
 0x195   :  { %v1784_v16 = vmax.f32 %v1748_v1, 0.0  ;;  %v1498_v44 = vmax.f32 %v5937_v17, %v1462_v26  ;;  %v3493_v50 = vpop.f32.mrb[82].mxu0 }
 0x196   :  { %v1751_v52 = vadd.f32 %v1610_v54, %v1499_v56  ;;  %v1465_v30 = vmax.f32 %v3493_v50, %v4783_v34  ;;  %v1109_v59 = vpop.f32.mrb[83].mxu0  ;;  %v5092_v54 = vpop.permute.xlu1 %1719 }
 0x197   :  { %v5083_v14 = vpack.c.bf16 %v1785_v2, %v1784_v16  ;;  %v1750_v31 = vadd.f32 %v1605_v48, %v1498_v44  ;;  %v1464_v41 = vmax.f32 %v1109_v59, %v4785_v35  ;;  %v5095_v48 = vpop.permute.xlu0 %1714 }
 0x198   :  { %v1787_v51 = vmax.f32 %v1751_v52, 0.0  ;;  %v1501_v18 = vmax.f32 %v5938_v13, %v1465_v30  ;;  %v5946_v13 = vld [vmem:[#allocation51_spill] sm:$0xff] }
 0x199   :  { %v1786_v49 = vmax.f32 %v1750_v31, 0.0  ;;  %v1500_v55 = vmax.f32 %v5939_v19, %v1464_v41  ;;  %v3496_v60 = vpop.f32.mrb[84].mxu0 }
 0x19a   :  { %v1753_v34 = vadd.f32 %v1620_v62, %v1501_v18  ;;  %v1467_v61 = vmax.f32 %v3496_v60, %v4791_v38  ;;  %v1119_v1 = vpop.f32.mrb[85].mxu0  ;;  %v1640_v16 = vpop.permute.xlu1 %1639  ;;  %v5948_v60 = vld [vmem:[#allocation47_spill] sm:$0xff] }
 0x19b   :  { %v5097_v35 = vpack.c.bf16 %v1787_v51, %v1786_v49  ;;  %v1752_v2 = vadd.f32 %v1615_v58, %v1500_v55  ;;  %v1466_v10 = vmax.f32 %v1119_v1, %v4793_v39  ;;  %v1635_v44 = vpop.permute.xlu0 %1634  ;;  %v5945_v51 = vmax.f32 %v4773_v29, %v4951_v12  ;;  %v5952_v29 = vld [vmem:[#allocation58_spill] sm:$0xff] }
 0x19c   :  { %v1789_v20 = vmax.f32 %v1753_v34, 0.0  ;;  %v1503_v21 = vmax.f32 %v5940_v7, %v1467_v61  ;;  %v5949_v34 = vld [vmem:[#allocation17_spill] sm:$0xff]  ;;  %v5953_v12 = vmax.f32 %v4781_v33, %v5952_v29  ;;  %v5975_v29 = vld [vmem:[#allocation66_spill] sm:$0xff] }
 0x19d   :  { %v1788_v4 = vmax.f32 %v1752_v2, 0.0  ;;  %v1502_v62 = vmax.f32 %v5941_v11, %v1466_v10  ;;  %v3499_v5 = vpop.f32.mrb[86].mxu0  ;;  %v5955_v11 = vld [vmem:[#allocation19_spill] sm:$0xff]  ;;  %v5960_v33 = vld [vmem:[#allocation61_spill] sm:$0xff] }
 0x19e   :  { %v1755_v38 = vadd.f32 %v1630_v0, %v1503_v21  ;;  %v1469_v26 = vmax.f32 %v3499_v5, %v4799_v42  ;;  %v1129_v27 = vpop.f32.mrb[87].mxu0  ;;  %v5954_v21 = vld [vmem:[#allocation52_spill] sm:$0xff] }
 0x19f   :  { %v5107_v56 = vpack.c.bf16 %v1789_v20, %v1788_v4  ;;  %v1754_v58 = vadd.f32 %v1625_v9, %v1502_v62  ;;  %v1468_v39 = vmax.f32 %v1129_v27, %v4801_v43  ;;  %v5957_v27 = vld [vmem:[#allocation21_spill] sm:$0xff] }
 0x1a0   :  { %v1791_v17 = vmax.f32 %v1755_v38, 0.0  ;;  %v1505_v3 = vmax.f32 %v5942_v22, %v1469_v26  ;;  %v5956_v38 = vld [vmem:[#allocation53_spill] sm:$0xff] }
 0x1a1   :  { %v1790_v50 = vmax.f32 %v1754_v58, 0.0  ;;  %v3502_v23 = vpop.f32.mrb[88].mxu0  ;;  %v1504_v0 = vmax.f32 %v5943_v8, %v1468_v39  ;;  %v5962_v8 = vld [vmem:[#allocation57_spill] sm:$0xff] }
 0x1a2   :  { %v1757_v42 = vadd.f32 %v1640_v16, %v1505_v3  ;;  %v1471_v52 = vmax.f32 %v3502_v23, %v4807_v46  ;;  %v1139_v30 = vpop.f32.mrb[89].mxu0  ;;  %v5947_v46 = vld [vmem:[#allocation15_spill] sm:$0xff] }
 0x1a3   :  { %v5117_v9 = vpack.c.bf16 %v1791_v17, %v1790_v50  ;;  %v1756_v43 = vadd.f32 %v1635_v44, %v1504_v0  ;;  %v1470_v59 = vmax.f32 %v1139_v30, %v4809_v47  ;;  %v5959_v17 = vmax.f32 %v4787_v36, %v5958_v32 }
 0x1a4   :  { %v1793_v31 = vmax.f32 %v1757_v42, 0.0  ;;  %v1507_v15 = vmax.f32 %v5944_v24, %v1471_v52  ;;  %v5961_v44 = vmax.f32 %v4789_v37, %v5960_v33  ;;  %v5963_v42 = vld [vmem:[#allocation23_spill] sm:$0xff] }
 0x1a5   :  { %v1792_v41 = vmax.f32 %v1756_v43, 0.0  ;;  %v1506_v6 = vmax.f32 %v5945_v51, %v1470_v59  ;;  %v3505_v25 = vpop.f32.mrb[90].mxu0  ;;  %v5964_v43 = vld [vmem:[#allocation59_spill] sm:$0xff] }
 0x1a6   :  { %v1759_v18 = vadd.f32 %v5946_v13, %v1507_v15  ;;  %v1473_v49 = vmax.f32 %v3505_v25, %v5947_v46  ;;  %v1149_v19 = vpop.f32.mrb[91].mxu0  ;;  %v5968_v25 = vld [vmem:[#allocation12_spill] sm:$0xff]  ;;  %v5969_v13 = vld [vmem:[#allocation65_spill] sm:$0xff] }
 0x1a7   :  { %v5128_v55 = vpack.c.bf16 %v1793_v31, %v1792_v41  ;;  %v1758_v47 = vadd.f32 %v5948_v60, %v1506_v6  ;;  %v1472_v61 = vmax.f32 %v1149_v19, %v5949_v34  ;;  %v5965_v31 = vld [vmem:[#allocation25_spill] sm:$0xff]  ;;  %v5966_v41 = vld [vmem:[#allocation64_spill] sm:$0xff]  ;;  %v5971_v19 = vld [vmem:[#allocation67_spill] sm:$0xff] }
 0x1a8   :  { %v1795_v1 = vmax.f32 %v1759_v18, 0.0  ;;  %v1509_v2 = vmax.f32 %v5951_v53, %v1473_v49  ;;  %v5967_v51 = vmax.f32 %v4795_v40, %v5966_v41  ;;  %v5970_v18 = vmax.f32 %v5968_v25, %v5969_v13  ;;  %v5974_v40 = vld [vmem:[#allocation13_spill] sm:$0xff]  ;;  %v5993_v25 = vld [vmem:[#allocation70_spill] sm:$0xff] }
 0x1a9   :  { %v1794_v10 = vmax.f32 %v1758_v47, 0.0  ;;  %v1508_v20 = vmax.f32 %v5953_v12, %v1472_v61  ;;  %v3508_v7 = vpop.f32.mrb[92].mxu0  ;;  %v5972_v47 = vld [vmem:[#allocation27_spill] sm:$0xff]  ;;  %v5976_v12 = vmax.f32 %v5974_v40, %v5975_v29  ;;  %v6000_v40 = vld [vmem:[#allocation89_spill] sm:$0xff] }
 0x1aa   :  { %v1761_v4 = vadd.f32 %v5954_v21, %v1509_v2  ;;  %v1475_v62 = vmax.f32 %v3508_v7, %v5955_v11  ;;  %v1159_v5 = vpop.f32.mrb[93].mxu0  ;;  %v5977_v21 = vmax.f32 %v4805_v45, %v4993_v63  ;;  %v5985_v45 = vld [vmem:[#allocation16_spill] sm:$0xff]  ;;  %v5986_v63 = vld [vmem:[#allocation69_spill] sm:$0xff] }
 0x1ab   :  { %v1760_v26 = vadd.f32 %v5956_v38, %v1508_v20  ;;  %v1474_v58 = vmax.f32 %v1159_v5, %v5957_v27  ;;  %v3705_v39 = vpack.c.bf16 %v1795_v1, %v1794_v10  ;;  %v5979_v38 = vld [vmem:[#allocation31_spill] sm:$0xff] }
 0x1ac   :  { %v1797_v16 = vmax.f32 %v1761_v4, 0.0  ;;  %v1511_v22 = vmax.f32 %v5959_v17, %v1475_v62  ;;  %v5978_v62 = vld [vmem:[#allocation73_spill] sm:$0xff]  ;;  %v5980_v27 = vld [vmem:[#allocation75_spill] sm:$0xff] }
 0x1ad   :  { %v1796_v3 = vmax.f32 %v1760_v26, 0.0  ;;  %v1510_v50 = vmax.f32 %v5961_v44, %v1474_v58  ;;  %v3511_v23 = vpop.f32.mrb[94].mxu0  ;;  %3706 = vmatprep.subr.bf16.mxu1 %v3705_v39  ;;  %v5981_v39 = vld [vmem:[#allocation33_spill] sm:$0xff] }
 0x1ae   :  { %v1763_v0 = vadd.f32 %v5962_v8, %v1511_v22  ;;  %v1477_v52 = vmax.f32 %v3511_v23, %v5963_v42  ;;  %v1169_v30 = vpop.f32.mrb[95].mxu0  ;;  %v5982_v22 = vld [vmem:[#allocation14_spill] sm:$0xff]  ;;  %v5987_v23 = vmax.f32 %v5985_v45, %v5986_v63  ;;  %v5988_v42 = vld [vmem:[#allocation81_spill] sm:$0xff] }
 0x1af   :  { %v1762_v59 = vadd.f32 %v5964_v43, %v1510_v50  ;;  %v1476_v24 = vmax.f32 %v1169_v30, %v5965_v31  ;;  %v5152_v15 = vpack.c.bf16 %v1797_v16, %v1796_v3  ;;  %v5983_v3 = vld [vmem:[#allocation68_spill] sm:$0xff]  ;;  %v5989_v30 = vld [vmem:[#allocation35_spill] sm:$0xff] }
 0x1b0   :  { %v1799_v36 = vmax.f32 %v1763_v0, 0.0  ;;  %v1513_v6 = vmax.f32 %v5967_v51, %v1477_v52  ;;  %v5984_v33 = vmax.f32 %v5982_v22, %v5983_v3  ;;  %v5990_v31 = vld [vmem:[#allocation83_spill] sm:$0xff] }
 0x1b1   :  { %v1798_v37 = vmax.f32 %v1762_v59, 0.0  ;;  %v1512_v46 = vmax.f32 %v5970_v18, %v1476_v24  ;;  %v3514_v49 = vpop.f32.mrb[96].mxu0 }
 0x1b2   :  { %v1765_v60 = vadd.f32 %v5971_v19, %v1513_v6  ;;  %v1479_v34 = vmax.f32 %v3514_v49, %v5972_v47  ;;  %v1179_v61 = vpop.f32.mrb[97].mxu0  ;;  %v5995_v49 = vld [vmem:[#allocation20_spill] sm:$0xff]  ;;  %v5996_v19 = vld [vmem:[#allocation71_spill] sm:$0xff] }
 0x1b3   :  { %v1764_v1 = vadd.f32 %v4995_v57, %v1512_v46  ;;  %v1478_v53 = vmax.f32 %v1179_v61, %v5973_v28  ;;  %v5164_v2 = vpack.c.bf16 %v1799_v36, %v1798_v37  ;;  %v5991_v36 = vld [vmem:[#allocation37_spill] sm:$0xff]  ;;  %v5992_v37 = vld [vmem:[#allocation18_spill] sm:$0xff]  ;;  %v5998_v61 = vld [vmem:[#allocation88_spill] sm:$0xff] }
 0x1b4   :  { %v1801_v10 = vmax.f32 %v1765_v60, 0.0  ;;  %v1515_v20 = vmax.f32 %v5976_v12, %v1479_v34  ;;  %v5994_v13 = vmax.f32 %v5992_v37, %v5993_v25  ;;  %v5997_v60 = vmax.f32 %v5995_v49, %v5996_v19  ;;  %v5999_v28 = vld [vmem:[#allocation39_spill] sm:$0xff]  ;;  %v6001_v12 = vld [vmem:[#allocation41_spill] sm:$0xff]  ;;  %v6018_v19 = vld [vmem:[#allocation30_spill] sm:$0xff] }
 0x1b5   :  { %v1800_v7 = vmax.f32 %v1764_v1, 0.0  ;;  %v1514_v4 = vmax.f32 %v5977_v21, %v1478_v53  ;;  %v3517_v11 = vpop.f32.mrb[98].mxu0 }
 0x1b6   :  { %v1767_v5 = vadd.f32 %v5978_v62, %v1515_v20  ;;  %v1481_v26 = vmax.f32 %v3517_v11, %v5979_v38  ;;  %v1189_v57 = vpop.f32.mrb[99].mxu0  ;;  %v6003_v11 = vld [vmem:[#allocation72_spill] sm:$0xff] }
 0x1b7   :  { %v1766_v58 = vadd.f32 %v5980_v27, %v1514_v4  ;;  %v1480_v16 = vmax.f32 %v1189_v57, %v5981_v39  ;;  %v5176_v32 = vpack.c.bf16 %v1801_v10, %v1800_v7  ;;  %v6002_v4 = vld [vmem:[#allocation22_spill] sm:$0xff] }
 0x1b8   :  { %v1803_v17 = vmax.f32 %v1767_v5, 0.0  ;;  %v1517_v44 = vmax.f32 %v5984_v33, %v1481_v26  ;;  %v6004_v62 = vmax.f32 %v6002_v4, %v6003_v11  ;;  %v6005_v26 = vld [vmem:[#allocation24_spill] sm:$0xff]  ;;  %v6006_v57 = vld [vmem:[#allocation74_spill] sm:$0xff] }
 0x1b9   :  { %v1802_v50 = vmax.f32 %v1766_v58, 0.0  ;;  %v1516_v8 = vmax.f32 %v5987_v23, %v1480_v16  ;;  %v3520_v0 = vpop.f32.mrb[100].mxu0  ;;  %v6007_v27 = vmax.f32 %v6005_v26, %v6006_v57 }
 0x1ba   :  { %v1769_v52 = vadd.f32 %v5988_v42, %v1517_v44  ;;  %v1483_v43 = vmax.f32 %v3520_v0, %v5989_v30  ;;  %v1199_v59 = vpop.f32.mrb[101].mxu0  ;;  %v1730_v44 = vpop.permute.xlu1 %1729  ;;  %v6010_v0 = vld [vmem:[#allocation26_spill] sm:$0xff]  ;;  %v6011_v42 = vld [vmem:[#allocation76_spill] sm:$0xff] }
 0x1bb   :  { %v1768_v24 = vadd.f32 %v5990_v31, %v1516_v8  ;;  %v1482_v41 = vmax.f32 %v1199_v59, %v5991_v36  ;;  %v5188_v51 = vpack.c.bf16 %v1803_v17, %v1802_v50  ;;  %v6008_v17 = vld [vmem:[#allocation43_spill] sm:$0xff]  ;;  %v6009_v50 = vld [vmem:[#allocation45_spill] sm:$0xff]  ;;  %v1725_v8 = vpop.permute.xlu0 %1724  ;;  %v6013_v59 = vld [vmem:[#allocation28_spill] sm:$0xff] }
 0x1bc   :  { %v1805_v6 = vmax.f32 %v1769_v52, 0.0  ;;  %v1519_v18 = vmax.f32 %v5994_v13, %v1483_v43  ;;  %v6012_v52 = vmax.f32 %v6010_v0, %v6011_v42  ;;  %v6014_v31 = vld [vmem:[#allocation77_spill] sm:$0xff] }
 0x1bd   :  { %v1804_v46 = vmax.f32 %v1768_v24, 0.0  ;;  %v1518_v47 = vmax.f32 %v5997_v60, %v1482_v41  ;;  %v3523_v34 = vpop.f32.mrb[102].mxu0  ;;  %v6017_v13 = vld [vmem:[#allocation49_spill] sm:$0xff]  ;;  %v6019_v60 = vld [vmem:[#allocation78_spill] sm:$0xff] }
 0x1be   :  { %v1771_v1 = vadd.f32 %v5998_v61, %v1519_v18  ;;  %v1485_v53 = vmax.f32 %v3523_v34, %v5999_v28  ;;  %v1209_v10 = vpop.f32.mrb[103].mxu0  ;;  %v6021_v28 = vld [vmem:[#allocation32_spill] sm:$0xff] }
 0x1bf   :  { %v1770_v29 = vadd.f32 %v6000_v40, %v1518_v47  ;;  %v1484_v20 = vmax.f32 %v1209_v10, %v6001_v12  ;;  %v5200_v7 = vpack.c.bf16 %v1805_v6, %v1804_v46  ;;  %v6016_v6 = vld [vmem:[#allocation48_spill] sm:$0xff]  ;;  %v6020_v47 = vmax.f32 %v6018_v19, %v6019_v60  ;;  %v1735_v12 = vpop.permute.xlu0 %1734  ;;  %v6042_v19 = vld [vmem:[#allocation54_spill] sm:$0xff] }
 0x1c0   :  { %v1807_v21 = vmax.f32 %v1771_v1, 0.0  ;;  %v1521_v5 = vmax.f32 %v6004_v62, %v1485_v53  ;;  %v1740_v1 = vpop.permute.xlu1 %1739  ;;  %v6022_v53 = vld [vmem:[#allocation79_spill] sm:$0xff] }
 0x1c1   :  { %v1806_v38 = vmax.f32 %v1770_v29, 0.0  ;;  %v1520_v58 = vmax.f32 %v6007_v27, %v1484_v20  ;;  %v3526_v39 = vpop.f32.mrb[104].mxu0  ;;  %v6023_v10 = vmax.f32 %v6021_v28, %v6022_v53  ;;  %v6026_v27 = vld [vmem:[#allocation6_spill] sm:$0xff]  ;;  %v6044_v28 = vld [vmem:[#allocation55_spill] sm:$0xff] }
 0x1c2   :  { %v1773_v16 = vadd.f32 %v5092_v54, %v1521_v5  ;;  %v1487_v22 = vmax.f32 %v3526_v39, %v6008_v17  ;;  %v1219_v3 = vpop.f32.mrb[105].mxu0  ;;  %v6015_v54 = vmax.f32 %v6013_v59, %v6014_v31  ;;  %v6025_v5 = vld [vmem:[#allocation82_spill] sm:$0xff] }
 0x1c3   :  { %v1772_v33 = vadd.f32 %v5095_v48, %v1520_v58  ;;  %v1486_v45 = vmax.f32 %v1219_v3, %v6009_v50  ;;  %v5212_v63 = vpack.c.bf16 %v1807_v21, %v1806_v38  ;;  %v6024_v21 = vld [vmem:[#allocation80_spill] sm:$0xff]  ;;  %v6027_v58 = vld [vmem:[#allocation34_spill] sm:$0xff] }
 0x1c4   :  { %v1809_v23 = vmax.f32 %v1773_v16, 0.0  ;;  %v1523_v30 = vmax.f32 %v6012_v52, %v1487_v22  ;;  %v6028_v39 = vmax.f32 %v6026_v27, %v6027_v58  ;;  %v6029_v22 = vld [vmem:[#allocation7_spill] sm:$0xff]  ;;  %v6030_v3 = vld [vmem:[#allocation36_spill] sm:$0xff]  ;;  %v6034_v52 = vld [vmem:[#allocation46_spill] sm:$0xff] }
 0x1c5   :  { %v1808_v43 = vmax.f32 %v1772_v33, 0.0  ;;  %v1522_v24 = vmax.f32 %v6015_v54, %v1486_v45  ;;  %v3529_v36 = vpop.f32.mrb[106].mxu0  ;;  %v6031_v33 = vmax.f32 %v6029_v22, %v6030_v3  ;;  %v6032_v45 = vld [vmem:[#allocation50_spill] sm:$0xff] }
 0x1c6   :  { %v1775_v41 = vadd.f32 %v1730_v44, %v1523_v30  ;;  %v1489_v48 = vmax.f32 %v3529_v36, %v6016_v6  ;;  %v1229_v37 = vpop.f32.mrb[107].mxu0  ;;  %v6037_v36 = vld [vmem:[#allocation38_spill] sm:$0xff] }
 0x1c7   :  { %v1774_v25 = vadd.f32 %v1725_v8, %v1522_v24  ;;  %v1488_v18 = vmax.f32 %v1229_v37, %v6017_v13  ;;  %v3733_v46 = vpack.c.bf16 %v1809_v23, %v1808_v43  ;;  %v6033_v8 = vld [vmem:[#allocation84_spill] sm:$0xff]  ;;  %v6035_v43 = vld [vmem:[#allocation85_spill] sm:$0xff]  ;;  %v6052_v27 = vld [vmem:[#allocation62_spill] sm:$0xff] }
 0x1c8   :  { %v1811_v49 = vmax.f32 %v1775_v41, 0.0  ;;  %v1525_v34 = vmax.f32 %v6020_v47, %v1489_v48  ;;  %v6036_v24 = vld [vmem:[#allocation8_spill] sm:$0xff]  ;;  %v6039_v37 = vld [vmem:[#allocation9_spill] sm:$0xff]  ;;  %v6043_v47 = vld [vmem:[#allocation86_spill] sm:$0xff] }
 0x1c9   :  { %v1810_v61 = vmax.f32 %v1774_v25, 0.0  ;;  %v1524_v40 = vmax.f32 %v6023_v10, %v1488_v18  ;;  %v3532_v29 = vpop.f32.mrb[108].mxu0  ;;  %v6038_v41 = vmax.f32 %v6036_v24, %v6037_v36  ;;  %v6040_v25 = vld [vmem:[#allocation40_spill] sm:$0xff]  ;;  %v6045_v10 = vld [vmem:[#allocation87_spill] sm:$0xff] }
 0x1ca   :  { %v1777_v20 = vadd.f32 %v1740_v1, %v1525_v34  ;;  %v1455_v4 = vmax.f32 %v6024_v21, %v3532_v29  ;;  %v1239_v11 = vpop.f32.mrb[109].mxu0  ;;  %v6041_v13 = vmax.f32 %v6039_v37, %v6040_v25 }
 0x1cb   :  { %v1776_v62 = vadd.f32 %v1735_v12, %v1524_v40  ;;  %v1454_v38 = vmax.f32 %v6025_v5, %v1239_v11  ;;  %v3737_v26 = vpack.c.bf16 %v1811_v49, %v1810_v61  ;;  %v6046_v12 = vld [vmem:[#allocation10_spill] sm:$0xff]  ;;  %v6050_v5 = vld [vmem:[#allocation44_spill] sm:$0xff] }
 0x1cc   :  { %v1813_v57 = vmax.f32 %v1777_v20, 0.0  ;;  %v1491_v16 = vmax.f32 %v6028_v39, %v1455_v4  ;;  %v6047_v20 = vld [vmem:[#allocation42_spill] sm:$0xff] }
 0x1cd   :  { %v1812_v17 = vmax.f32 %v1776_v62, 0.0  ;;  %v1490_v44 = vmax.f32 %v6031_v33, %v1454_v38  ;;  %v3535_v50 = vpop.f32.mrb[110].mxu0  ;;  %v6048_v21 = vmax.f32 %v6046_v12, %v6047_v20  ;;  %v6049_v62 = vld [vmem:[#allocation11_spill] sm:$0xff] }
 0x1ce   :  { %v1743_v23 = vadd.f32 %v6032_v45, %v1491_v16  ;;  %v1457_v0 = vmax.f32 %v6033_v8, %v3535_v50  ;;  %v1249_v42 = vpop.f32.mrb[111].mxu0  ;;  %v6051_v38 = vmax.f32 %v6049_v62, %v6050_v5  ;;  %v6053_v16 = vld [vmem:[#allocation63_spill] sm:$0xff]  ;;  %v1835_v50 = vld [vmem:[%s5800_s3 + $0xa8] sm:$0xff]  ;;  %v1822_v8 = vld [vmem:[%s5800_s3 + $0x40] sm:$0xff] }
 0x1cf   :  { %v1742_v30 = vadd.f32 %v6034_v52, %v1490_v44  ;;  %v1456_v59 = vmax.f32 %v6035_v43, %v1249_v42  ;;  %v3741_v31 = vpack.c.bf16 %v1813_v57, %v1812_v17  ;;  %v1836_v44 = vld [vmem:[%s5800_s3 + $0xb0] sm:$0xff]  ;;  %v1831_v52 = vld [vmem:[%s5800_s3 + $0x88] sm:$0xff]  ;;  %v1837_v43 = vld [vmem:[%s5800_s3 + $0xb8] sm:$0xff] }
 0x1d0   :  { %v1779_v54 = vmax.f32 %v1743_v23, 0.0  ;;  %v1493_v6 = vmax.f32 %v6038_v41, %v1457_v0  ;;  %v1816_v45 = vld [vmem:[%s5800_s3 + $0x10] sm:$0xff]  ;;  %v1819_v23 = vld [vmem:[%s5800_s3 + $0x28] sm:$0xff]  ;;  %v1825_v0 = vld [vmem:[%s5800_s3 + $0x58] sm:$0xff] }
 0x1d1   :  { %v1778_v48 = vmax.f32 %v1742_v30, 0.0  ;;  %v1492_v18 = vmax.f32 %v6041_v13, %v1456_v59  ;;  %v3538_v49 = vpop.f32.mrb[112].mxu0  ;;  %v1828_v42 = vld [vmem:[%s5800_s3 + $0x70] sm:$0xff]  ;;  %v1834_v30 = vld [vmem:[%s5800_s3 + $0xa0] sm:$0xff] }
 0x1d2   :  { %v1745_v60 = vadd.f32 %v6042_v19, %v1493_v6  ;;  %v1459_v34 = vmax.f32 %v6043_v47, %v3538_v49  ;;  %v1259_v61 = vpop.f32.mrb[113].mxu0 }
 0x1d3   :  { %v3707_v1 = vpack.c.bf16 %v1779_v54, %v1778_v48  ;;  %v1744_v53 = vadd.f32 %v6044_v28, %v1492_v18  ;;  %v1458_v40 = vmax.f32 %v6045_v10, %v1259_v61 }
 0x1d4   :  { %v1781_v29 = vmax.f32 %v1745_v60, 0.0  ;;  %v1495_v4 = vmax.f32 %v6048_v21, %v1459_v34 }
 0x1d5   :  { %v1780_v11 = vmax.f32 %v1744_v53, 0.0  ;;  %v1494_v57 = vmax.f32 %v6051_v38, %v1458_v40  ;;  %3708 = vmatpush3.bf16.msra.mxu1 %v3707_v1 }
 0x1d6   :  { %v1747_v58 = vadd.f32 %v6052_v27, %v1495_v4  ;;  %3710 = vmatprep.subr.bf16.mxu1 %v5152_v15  ;;  %v1814_v15 = vld [vmem:[%s5800_s3] sm:$0xff] }
 0x1d7   :  { %v3711_v39 = vpack.c.bf16 %v1781_v29, %v1780_v11  ;;  %v1746_v17 = vadd.f32 %v6053_v16, %v1494_v57 }
 0x1d8   :  { %v1783_v22 = vmax.f32 %v1747_v58, 0.0 }
 0x1d9   :  { %v1782_v3 = vmax.f32 %v1746_v17, 0.0  ;;  %3712 = vmatpush3.bf16.msra.mxu1 %v3711_v39 }
 0x1da   :  { %3714 = vmatprep.subr.bf16.mxu1 %v5164_v2  ;;  %v1823_v2 = vld [vmem:[%s5800_s3 + $0x48] sm:$0xff] }
 0x1db   :  { %v3715_v33 = vpack.c.bf16 %v1783_v22, %v1782_v3  ;;  %v3921_v22 = vmov 1983009808  }
 0x1dc   :  { %v2099_v3 = vunpack.c.l.s4 %v3921_v22 }
 0x1dd   :  { %3716 = vmatpush3.bf16.msra.mxu1 %v3715_v33  ;;  %v2101_v33 = vlaneseq }
 0x1de   :  { %3718 = vmatprep.subr.bf16.mxu1 %v5176_v32  ;;  %v1827_v32 = vld [vmem:[%s5800_s3 + $0x68] sm:$0xff] }
 0x1e1   :  { %3720 = vmatpush3.bf16.msra.mxu1 %v5083_v14  ;;  %v1818_v14 = vld [vmem:[%s5800_s3 + $0x20] sm:$0xff] }
 0x1e2   :  { %3722 = vmatprep.subr.bf16.mxu1 %v5188_v51  ;;  %v1826_v51 = vld [vmem:[%s5800_s3 + $0x60] sm:$0xff] }
 0x1e5   :  { %3724 = vmatpush3.bf16.msra.mxu1 %v5097_v35  ;;  %v1817_v35 = vld [vmem:[%s5800_s3 + $0x18] sm:$0xff] }
 0x1e6   :  { %3726 = vmatprep.subr.bf16.mxu1 %v5200_v7  ;;  %v1830_v7 = vld [vmem:[%s5800_s3 + $0x80] sm:$0xff] }
 0x1e9   :  { %3728 = vmatpush3.bf16.msra.mxu1 %v5107_v56  ;;  %v1821_v56 = vld [vmem:[%s5800_s3 + $0x38] sm:$0xff] }
 0x1ea   :  { %3730 = vmatprep.subr.bf16.mxu1 %v5212_v63  ;;  %v1829_v63 = vld [vmem:[%s5800_s3 + $0x78] sm:$0xff] }
 0x1ed   :  { %3732 = vmatpush3.bf16.msra.mxu1 %v5117_v9  ;;  %v1820_v9 = vld [vmem:[%s5800_s3 + $0x30] sm:$0xff] }
 0x1ee   :  { %3734 = vmatprep.subr.bf16.mxu1 %v3733_v46  ;;  %v1833_v46 = vld [vmem:[%s5800_s3 + $0x98] sm:$0xff] }
 0x1f1   :  { %3736 = vmatpush3.bf16.msra.mxu1 %v5128_v55  ;;  %v1824_v55 = vld [vmem:[%s5800_s3 + $0x50] sm:$0xff] }
 0x1f2   :  { %3738 = vmatprep.subr.bf16.mxu1 %v3737_v26 }
 0x1f4   :  { %1928 = vmatmul.mubr.f32.vlgmr.msra.gmra.mrb[30].mxu1 %v1814_v15 }
 0x1f5   :  { %3740 = vmatpush3.bf16.msra.mxu1 %v3737_v26  ;;  %1932 = vmatprep.mubr.f32.mxu1 %v1818_v14  ;;  %v1832_v26 = vld [vmem:[%s5800_s3 + $0x90] sm:$0xff]  ;;  %s3922_s3 = smov 124  }
 0x1f6   :  { %3742 = vmatprep.subr.bf16.mxu1 %v3741_v31 }
 0x1f8   :  { %1933 = vmatmul.mubr.f32.gmra.mrb[32].mxu1 %v1817_v35 }
 0x1f9   :  { %3744 = vmatpush3.bf16.msra.mxu1 %v3741_v31  ;;  %1937 = vmatprep.mubr.f32.mxu1 %v1821_v56 }
 0x1fc   :  { %1938 = vmatmul.mubr.f32.gmra.mrb[34].mxu1 %v1820_v9 }
 0x1fd   :  { %1942 = vmatprep.mubr.f32.mxu1 %v1824_v55  ;;  %v2100_v55 = vunpack.c.0.s8 %v2099_v3  ;;  %v2344_v3 = vld [vmem:[%s5802_s5 + $0xc0] sm:$0xff] }
 0x200   :  { %1943 = vmatmul.mubr.f32.gmra.mrb[36].mxu1 %v1823_v2  ;;  %v2102_v2 = vshrl.u32 %v2101_v33, 7  ;;  %v2345_v33 = vld [vmem:[%s5802_s5 + $0xc8] sm:$0xff] }
 0x201   :  { %1947 = vmatprep.mubr.f32.mxu1 %v1827_v32 }
 0x204   :  { %1948 = vmatmul.mubr.f32.gmra.mrb[38].mxu1 %v1826_v51 }
 0x205   :  { %1952 = vmatprep.mubr.f32.mxu1 %v1830_v7  ;;  %v2089_v7 = vpop.permute.xlu1 %2088 }
 0x208   :  { %1953 = vmatmul.mubr.f32.gmra.mrb[40].mxu1 %v1829_v63 }
 0x209   :  { %1957 = vmatprep.mubr.f32.mxu1 %v1833_v46  ;;  %v2084_v46 = vpop.permute.xlu0 %2083 }
 0x20c   :  { %1958 = vmatmul.mubr.f32.gmra.mrb[42].mxu1 %v1832_v26 }
 0x20d   :  { %1962 = vmatprep.mubr.f32.mxu1 %v1836_v44  ;;  %v5346_v44 = vsub.s32 %v2100_v55, %v2102_v2  ;;  %v2346_v55 = vld [vmem:[%s5802_s5 + $0xd0] sm:$0xff]  ;;  %v2347_v2 = vld [vmem:[%s5802_s5 + $0xd8] sm:$0xff] }
 0x210   :  { %1963 = vmatmul.mubr.f32.gmra.mrb[44].mxu1 %v1835_v50 }
 0x211   :  { %3592 = vmatprep.mubr.msk.f32.mxu1 %vm1838_vm2, %v1816_v45 }
 0x214   :  { %3593 = vmatmul.mubr.msk.f32.vlgmr.msra.gmra.mrb[46].mxu1 %vm1838_vm2, %v1819_v23 }
 0x215   :  { %3595 = vmatprep.mubr.msk.f32.mxu1 %vm1838_vm2, %v1822_v8 }
 0x218   :  { %3596 = vmatmul.mubr.msk.f32.gmra.mrb[48].mxu1 %vm1838_vm2, %v1825_v0 }
 0x219   :  { %3598 = vmatprep.mubr.msk.f32.mxu1 %vm1838_vm2, %v1828_v42 }
 0x21c   :  { %3599 = vmatmul.mubr.msk.f32.gmra.mrb[50].mxu1 %vm1838_vm2, %v1831_v52 }
 0x21d   :  { %3601 = vmatprep.mubr.msk.f32.mxu1 %vm1838_vm2, %v1834_v30 }
 0x220   :  { %3602 = vmatmul.mubr.msk.f32.gmra.mrb[52].mxu1 %vm1838_vm2, %v1837_v43  ;;  %vm5510_vm2 = vmor %vm2165_vm13, %vm2164_vm12  ;;  %vm2217_vm12 = vcmask 680320   ;;  %vm2233_vm13 = vcmask 1041344  }
 0x2c7   :  { %v3199_v59 = vpop.f32.mrb[30].mxu1 }
 0x2c8   :  { %v3200_v31 = vpop.f32.mrb[31].mxu1 }
 0x2c9   :  { %v3201_v54 = vadd.f32 %v3200_v31, %v3199_v59 }
 0x2cb   :  { %v3202_v24 = vpop.f32.mrb[32].mxu1 }
 0x2cc   :  { %v3203_v36 = vpop.f32.mrb[33].mxu1 }
 0x2cd   :  { %v3204_v41 = vadd.f32 %v3203_v36, %v3202_v24  ;;  %v2336_v36 = vld [vmem:[%s5802_s5 + $0x80] sm:$0xff] }
 0x2cf   :  { %v3205_v6 = vpop.f32.mrb[34].mxu1 }
 0x2d0   :  { %v3206_v48 = vpop.f32.mrb[35].mxu1 }
 0x2d1   :  { %v3207_v37 = vadd.f32 %v3206_v48, %v3205_v6 }
 0x2d3   :  { %v3208_v25 = vpop.f32.mrb[36].mxu1 }
 0x2d4   :  { %v3209_v13 = vpop.f32.mrb[37].mxu1 }
 0x2d5   :  { %v3210_v18 = vadd.f32 %v3209_v13, %v3208_v25  ;;  %v2320_v25 = vld [vmem:[%s5802_s5] sm:$0xff]  ;;  %v2321_v13 = vld [vmem:[%s5802_s5 + $0x8] sm:$0xff] }
 0x2d7   :  { %v3211_v49 = vpop.f32.mrb[38].mxu1 }
 0x2d8   :  { %v3212_v19 = vpop.f32.mrb[39].mxu1 }
 0x2d9   :  { %v3213_v60 = vadd.f32 %v3212_v19, %v3211_v49  ;;  %v2338_v49 = vld [vmem:[%s5802_s5 + $0x90] sm:$0xff]  ;;  %v2339_v19 = vld [vmem:[%s5802_s5 + $0x98] sm:$0xff] }
 0x2db   :  { %v3214_v47 = vpop.f32.mrb[40].mxu1 }
 0x2dc   :  { %v3215_v34 = vpop.f32.mrb[41].mxu1 }
 0x2dd   :  { %v3216_v61 = vadd.f32 %v3215_v34, %v3214_v47 }
 0x2df   :  { %v3217_v1 = vpop.f32.mrb[42].mxu1 }
 0x2e0   :  { %v3218_v28 = vpop.f32.mrb[43].mxu1 }
 0x2e1   :  { %v3219_v53 = vadd.f32 %v3218_v28, %v3217_v1  ;;  %v2322_v1 = vld [vmem:[%s5802_s5 + $0x10] sm:$0xff]  ;;  %v2323_v28 = vld [vmem:[%s5802_s5 + $0x18] sm:$0xff] }
 0x2e3   :  { %v3220_v10 = vpop.f32.mrb[44].mxu1 }
 0x2e4   :  { %v3221_v40 = vpop.f32.mrb[45].mxu1 }
 0x2e5   :  { %v3222_v29 = vadd.f32 %v3221_v40, %v3220_v10  ;;  %v2340_v10 = vld [vmem:[%s5802_s5 + $0xa0] sm:$0xff]  ;;  %v2341_v40 = vld [vmem:[%s5802_s5 + $0xa8] sm:$0xff] }
 0x2e7   :  { %v3594_v12 = vpop.f32.mrb[46].mxu1 }
 0x2e8   :  { %v2040_v20 = vadd.f32 %v3594_v12, %v3204_v41  ;;  %v2034_v21 = vpop.f32.mrb[47].mxu1  ;;  %v2337_v41 = vld [vmem:[%s5802_s5 + $0x88] sm:$0xff] }
 0x2e9   :  { %v2035_v4 = vadd.f32 %v3201_v54, %v2034_v21  ;;  %v3753_v21 = vpack.c.bf16 %v2341_v40, %v2340_v10 }
 0x2eb   :  { %v3597_v11 = vpop.f32.mrb[48].mxu1 }
 0x2ec   :  { %v2050_v62 = vadd.f32 %v3597_v11, %v3210_v18  ;;  %v2044_v5 = vpop.f32.mrb[49].mxu1  ;;  %v3747_v18 = vpack.c.bf16 %v2321_v13, %v2320_v25  ;;  %v2325_v11 = vld [vmem:[%s5802_s5 + $0x28] sm:$0xff] }
 0x2ed   :  { %v2045_v38 = vadd.f32 %v3207_v37, %v2044_v5  ;;  %v3745_v37 = vpack.c.bf16 %v2337_v41, %v2336_v36  ;;  %v2342_v5 = vld [vmem:[%s5802_s5 + $0xb0] sm:$0xff]  ;;  %v2369_v36 = vld [vmem:[%s5802_s5 + $0x188] sm:$0xff] }
 0x2ee   :  { %v2074_v57 = vmax.f32 %v2040_v20, %v2050_v62 }
 0x2ef   :  { %v2073_v27 = vmax.f32 %v2035_v4, %v2045_v38  ;;  %v3600_v58 = vpop.f32.mrb[50].mxu1  ;;  %3746 = vmatprep.subr.bf16.mxu1 %v3745_v37  ;;  %v2324_v4 = vld [vmem:[%s5802_s5 + $0x20] sm:$0xff]  ;;  %v2343_v38 = vld [vmem:[%s5802_s5 + $0xb8] sm:$0xff] }
 0x2f0   :  { %v2060_v39 = vadd.f32 %v3600_v58, %v3216_v61  ;;  %v2054_v16 = vpop.f32.mrb[51].mxu1  ;;  %3748 = vmatpush3.bf16.msra.mxu1 %v3747_v18  ;;  %v3749_v61 = vpack.c.bf16 %v2339_v19, %v2338_v49  ;;  %v3755_v62 = vpack.c.bf16 %v2325_v11, %v2324_v4 }
 0x2f1   :  { %v2055_v17 = vadd.f32 %v3213_v60, %v2054_v16  ;;  %v2326_v16 = vld [vmem:[%s5802_s5 + $0x30] sm:$0xff] }
 0x2f2   :  { %3750 = vmatprep.subr.bf16.mxu1 %v3749_v61 }
 0x2f3   :  { %v3603_v15 = vpop.f32.mrb[52].mxu1 }
 0x2f4   :  { %v2070_v14 = vadd.f32 %v3603_v15, %v3222_v29  ;;  %v2064_v35 = vpop.f32.mrb[53].mxu1 }
 0x2f5   :  { %v2065_v56 = vadd.f32 %v3219_v53, %v2064_v35  ;;  %v3751_v53 = vpack.c.bf16 %v2323_v28, %v2322_v1  ;;  %v2328_v35 = vld [vmem:[%s5802_s5 + $0x40] sm:$0xff] }
 0x2f6   :  { %v2076_v9 = vmax.f32 %v2060_v39, %v2070_v14  ;;  %v3757_v39 = vpack.c.bf16 %v2343_v38, %v2342_v5  ;;  %v3761_v14 = vpack.c.bf16 %v2345_v33, %v2344_v3 }
 0x2f7   :  { %v2075_v32 = vmax.f32 %v2055_v17, %v2065_v56  ;;  %3752 = vmatpush3.bf16.msra.mxu1 %v3751_v53  ;;  %v2327_v17 = vld [vmem:[%s5802_s5 + $0x38] sm:$0xff]  ;;  %v2329_v56 = vld [vmem:[%s5802_s5 + $0x48] sm:$0xff] }
 0x2f8   :  { %v2078_v51 = vmax.f32 %v2074_v57, %v2076_v9  ;;  %3754 = vmatprep.subr.bf16.mxu1 %v3753_v21  ;;  %v3759_v22 = vpack.c.bf16 %v2327_v17, %v2326_v16  ;;  %v3763_v9 = vpack.c.bf16 %v2329_v56, %v2328_v35 }
 0x2f9   :  { %v2077_v63 = vmax.f32 %v2073_v27, %v2075_v32  ;;  %v3765_v32 = vpack.c.bf16 %v2347_v2, %v2346_v55 }
 0x2fa   :  { %v2092_v26 = vadd.f32 %v2089_v7, %v2078_v51  ;;  %v2330_v51 = vld [vmem:[%s5802_s5 + $0x50] sm:$0xff]  ;;  %v2331_v7 = vld [vmem:[%s5802_s5 + $0x58] sm:$0xff] }
 0x2fb   :  { %v2091_v50 = vadd.f32 %v2084_v46, %v2077_v63  ;;  %3756 = vmatpush3.bf16.msra.mxu1 %v3755_v62  ;;  %v3767_v63 = vpack.c.bf16 %v2331_v7, %v2330_v51  ;;  %v2348_v46 = vld [vmem:[%s5802_s5 + $0xe0] sm:$0xff] }
 0x2fc   :  { %v2094_v45 = vmax.f32 %v2092_v26, 0.0  ;;  %3758 = vmatprep.subr.bf16.mxu1 %v3757_v39  ;;  %v2349_v26 = vld [vmem:[%s5802_s5 + $0xe8] sm:$0xff] }
 0x2fd   :  { %v2093_v23 = vmax.f32 %v2091_v50, 0.0  ;;  %v3769_v50 = vpack.c.bf16 %v2349_v26, %v2348_v46 }
 0x2fe   :  { %v2175_v8 = vrot.slane %v2094_v45, %v5346_v44  ;;  %v2206_v43 = vcombine.high %v2094_v45, %v2094_v45  ;;  %v2332_v45 = vld [vmem:[%s5802_s5 + $0x60] sm:$0xff] }
 0x2ff   :  { %2096 = vst.msk [vmem:[#allocation2] sm:$0x1] %vm2095_vm3, %v2093_v23  ;;  %v2104_v42 = vrot.slane %v2093_v23, %v5346_v44  ;;  %v2130_v30 = vcombine.high %v2093_v23, %v2093_v23  ;;  %3760 = vmatpush3.bf16.msra.mxu1 %v3759_v22  ;;  %v2333_v23 = vld [vmem:[%s5802_s5 + $0x68] sm:$0xff] }
 0x300   :  { %2280 = vrot.lane.b32.xlu1 %v2175_v8, %s3922_s3  ;;  %2176 = vrot.lane.b32.xlu0 %v2175_v8, %s3923_s21  ;;  %v2188_v0 = vcombine.high %v2175_v8, %v2175_v8  ;;  %v2181_v31 = vrot.slane %v2175_v8, 7  ;;  %v5358_v54 = vrot.slane %v2206_v43, %v5346_v44  ;;  %v3771_v8 = vpack.c.bf16 %v2333_v23, %v2332_v45  ;;  %v2335_v43 = vld [vmem:[%s5802_s5 + $0x78] sm:$0xff] }
 0x301   :  { %v2112_v52 = vcombine.high %v2104_v42, %v2104_v42  ;;  %v2137_v59 = vrot.slane %v2130_v30, %v5346_v44  ;;  %v2105_v48 = vrot.slane %v2104_v42, 7  ;;  %3762 = vmatprep.subr.bf16.mxu1 %v3761_v14 }
 0x302   :  { %v2182_v24 = vrot.slane %v2181_v31, 2  ;;  %v5369_v6 = vcombine.high %v5358_v54, %v5358_v54  ;;  %v2199_v34 = vrot.slane %v2188_v0, 7 }
 0x303   :  { %v2150_v60 = vcombine.high %v2137_v59, %v2137_v59  ;;  %v5385_v47 = vrot.slane %v2105_v48, 2  ;;  %v2118_v12 = vrot.slane %v2112_v52, 7  ;;  %v2143_v20 = vrot.slane %v2137_v59, 7  ;;  %3764 = vmatpush3.bf16.msra.mxu1 %v3763_v9 }
 0x304   :  { %2189 = vrot.lane.b32.xlu0 %v2188_v0, %s3924_s22  ;;  %2244 = vrot.lane.b32.xlu1 %v2104_v42, %s3925_s23  ;;  %v2200_v29 = vrot.slane %v2199_v34, 2  ;;  %v2351_v42 = vld [vmem:[%s5802_s5 + $0xf8] sm:$0xff]  ;;  %v2237_v48 = vrot.slane %v5369_v6, 7 }
 0x305   :  { %v2119_v57 = vrot.slane %v2118_v12, 2  ;;  %v2144_v27 = vrot.slane %v2143_v20, 2  ;;  %v2156_v58 = vrot.slane %v2150_v60, 7  ;;  %3766 = vmatprep.subr.bf16.mxu1 %v3765_v32 }
 0x306   :  { %v2238_v25 = vrot.slane %v2237_v48, 2  ;;  %v2355_v48 = vld [vmem:[%s5802_s5 + $0x118] sm:$0xff] }
 0x307   :  { %v2157_v15 = vrot.slane %v2156_v58, 2  ;;  %3768 = vmatpush3.bf16.msra.mxu1 %v3767_v63  ;;  %v2364_v58 = vld [vmem:[%s5802_s5 + $0x160] sm:$0xff] }
 0x308   :  { %2288 = vrot.lane.b32.xlu1 %v2188_v0, %s3926_s24  ;;  %2113 = vrot.lane.b32.xlu0 %v2112_v52, %s3927_s25  ;;  %v2350_v0 = vld [vmem:[%s5802_s5 + $0xf0] sm:$0xff] }
 0x309   :  { %v3773_v30 = vpack.c.bf16 %v2351_v42, %v2350_v0  ;;  %3770 = vmatprep.subr.bf16.mxu1 %v3769_v50  ;;  %v2353_v0 = vld [vmem:[%s5802_s5 + $0x108] sm:$0xff] }
 0x30b   :  { %3772 = vmatpush3.bf16.msra.mxu1 %v3771_v8  ;;  %v2352_v8 = vld [vmem:[%s5802_s5 + $0x100] sm:$0xff] }
 0x30c   :  { %2250 = vrot.lane.b32.xlu1 %v2112_v52, %s3928_s26  ;;  %2138 = vrot.lane.b32.xlu0 %v2137_v59, %s3929_s27  ;;  %v2334_v52 = vld [vmem:[%s5802_s5 + $0x70] sm:$0xff] }
 0x30d   :  { %v3775_v31 = vpack.c.bf16 %v2335_v43, %v2334_v52  ;;  %3774 = vmatprep.subr.bf16.mxu1 %v3773_v30  ;;  %v2370_v30 = vld [vmem:[%s5802_s5 + $0x190] sm:$0xff]  ;;  %v2371_v43 = vld [vmem:[%s5802_s5 + $0x198] sm:$0xff] }
 0x30f   :  { %3776 = vmatpush3.bf16.msra.mxu1 %v3775_v31  ;;  %v3779_v31 = vpack.c.bf16 %v2353_v0, %v2352_v8  ;;  %v2643_v0 = vld [vmem:[%s5804_s7] sm:$0xff] }
 0x310   :  { %2284 = vrot.lane.b32.xlu1 %v2182_v24, %s3923_s21  ;;  %2261 = vrot.lane.b32.xlu0 %v2137_v59, %s3930_s28  ;;  %v2219_v59 = vrot.slane %v5358_v54, 7 }
 0x312   :  { %v2220_v41 = vrot.slane %v2219_v59, 2 }
 0x314   :  { %2227 = vrot.lane.b32.xlu1 %v5369_v6, %s3931_s15  ;;  %2183 = vrot.lane.b32.xlu0 %v2182_v24, %s3926_s24  ;;  %s3932_s24 = smov 88   ;;  %v2368_v24 = vld [vmem:[%s5802_s5 + $0x180] sm:$0xff] }
 0x315   :  { %v3777_v37 = vpack.c.bf16 %v2369_v36, %v2368_v24  ;;  %v3781_v36 = vpack.c.bf16 %v2371_v43, %v2370_v30  ;;  %v2646_v43 = vld [vmem:[%s5804_s7 + $0x18] sm:$0xff] }
 0x317   :  { %3778 = vmatprep.subr.bf16.mxu1 %v3777_v37 }
 0x318   :  { %2151 = vrot.lane.b32.xlu0 %v2150_v60, %s3932_s24  ;;  %2107 = vrot.lane.b32.xlu1 %v5385_v47, %s3928_s26 }
 0x31c   :  { %2201 = vrot.lane.b32.xlu0 %v2200_v29, %s3933_s4  ;;  %2269 = vrot.lane.b32.xlu1 %v2150_v60, %s3934_s16 }
 0x320   :  { %2120 = vrot.lane.b32.xlu0 %v2119_v57, %s3930_s28  ;;  %2265 = vrot.lane.b32.xlu1 %v2144_v27, %s3929_s27 }
 0x324   :  { %2254 = vrot.lane.b32.xlu0 %v2119_v57, %s3927_s25  ;;  %2158 = vrot.lane.b32.xlu1 %v2157_v15, %s3922_s3  ;;  %s3937_s3 = smov 28  }
 0x328   :  { %2295 = vrot.lane.b32.xlu0 %v2200_v29, %s3924_s22  ;;  %2273 = vrot.lane.b32.xlu1 %v2157_v15, %s3932_s24  ;;  %v2367_v15 = vld [vmem:[%s5802_s5 + $0x178] sm:$0xff]  ;;  %s3941_s22 = smov [#allocation3]  }
 0x329   :  { %s2841_s24 = sshll.u32 %s3941_s22, 4  ;;  %s2842_s24 = int_to_ptr.vmem [resolvable:$true] %s2841_s24 }
 0x32a   :  { %p3901_p1 = scmp.lt.s32.totalorder %s2842_s24, %s2842_s24 }
 0x32c   :  { %2145 = vrot.lane.b32.xlu0 %v2144_v27, %s3934_s16  ;;  %2307 = vrot.lane.b32.xlu1 %v5369_v6, %s3935_s17 }
 0x330   :  { %2214 = vrot.lane.b32.xlu0 %v5358_v54, %s3936_s1  ;;  %2299 = vrot.lane.b32.xlu1 %v5358_v54, %s3933_s4 }
 0x334   :  { %2221 = vrot.lane.b32.xlu0 %v2220_v41, %s3935_s17  ;;  %2303 = vrot.lane.b32.xlu1 %v2220_v41, %s3936_s1  ;;  %v2354_v41 = vld [vmem:[%s5802_s5 + $0x110] sm:$0xff] }
 0x338   :  { %2239 = vrot.lane.b32.xlu0 %v2238_v25, %s3937_s3  ;;  %2314 = vrot.lane.b32.xlu1 %v2238_v25, %s3931_s15  ;;  %v2372_v25 = vld [vmem:[%s5802_s5 + $0x1a0] sm:$0xff] }
 0x372   :  { %v5490_v54 = vpop.permute.xlu1 %2280  ;;  %v5492_v13 = vpop.permute.xlu0 %2176 }
 0x376   :  { %v5494_v18 = vpop.permute.xlu0 %2189  ;;  %v2245_v49 = vpop.permute.xlu1 %2244 }
 0x377   :  { %2247 = vst.msk [vmem:[#allocation2 + $0x1] sm:$0x1] %vm2095_vm3, %v2245_v49  ;;  %vm2195_vm3 = vcmask 1041216   ;;  %v2191_v14 = vrot.slane %v5494_v18, 6  ;;  %v2357_v49 = vld [vmem:[%s5802_s5 + $0x128] sm:$0xff] }
 0x378   :  { %2249 = vst.msk [vmem:[#allocation2 + $0x1] sm:$0x1] %vm2110_vm4, %v5385_v47 }
 0x37a   :  { %v5499_v6 = vpop.permute.xlu1 %2288  ;;  %v2114_v19 = vpop.permute.xlu0 %2113 }
 0x37b   :  { %v2290_v16 = vrot.slane %v5499_v6, 6 }
 0x37d   :  { %v2292_v35 = vsel %vm2291_vm6, %v2290_v16, %v5499_v6  ;;  %v2374_v6 = vld [vmem:[%s5802_s5 + $0x1b0] sm:$0xff]  ;;  %vm2429_vm6 = vcmask 523264  }
 0x37e   :  { %v2251_v60 = vpop.permute.xlu1 %2250  ;;  %v2139_v34 = vpop.permute.xlu0 %2138  ;;  %v2382_v16 = vld [vmem:[%s5802_s5 + $0x1f0] sm:$0xff] }
 0x37f   :  { %2253 = vst.msk [vmem:[#allocation2 + $0x1] sm:$0x1] %vm2116_vm5, %v2251_v60 }
 0x382   :  { %v2285_v61 = vpop.permute.xlu1 %2284  ;;  %v2262_v1 = vpop.permute.xlu0 %2261 }
 0x386   :  { %v5501_v28 = vpop.permute.xlu1 %2227  ;;  %v5503_v53 = vpop.permute.xlu0 %2183 }
 0x387   :  { %v2229_v32 = vrot.slane %v5501_v28, 6 }
 0x38a   :  { %v2152_v10 = vpop.permute.xlu0 %2151  ;;  %v2108_v40 = vpop.permute.xlu1 %2107 }
 0x38b   :  { %2111 = vst.msk [vmem:[#allocation2] sm:$0x1] %vm2110_vm4, %v2108_v40  ;;  %vm2196_vm4 = vcmask 92162  }
 0x38c   :  { %2117 = vst.msk [vmem:[#allocation2] sm:$0x1] %vm2116_vm5, %v2114_v19  ;;  %vm2179_vm5 = vcmask 549120   ;;  %v2375_v19 = vld [vmem:[%s5802_s5 + $0x1b8] sm:$0xff] }
 0x38e   :  { %v5506_v29 = vpop.permute.xlu0 %2201  ;;  %v2270_v47 = vpop.permute.xlu1 %2269 }
 0x392   :  { %v2121_v12 = vpop.permute.xlu0 %2120  ;;  %v2266_v20 = vpop.permute.xlu1 %2265 }
 0x393   :  { %v2122_v21 = vrot.slane %v2121_v12, 6 }
 0x395   :  { %v2124_v4 = vsel %vm2123_vm8, %v2122_v21, %v2121_v12  ;;  %vm2186_vm8 = vcmask 844320   ;;  %v2378_v12 = vld [vmem:[%s5802_s5 + $0x1d0] sm:$0xff] }
 0x396   :  { %2129 = vst.msk [vmem:[#allocation2] sm:$0x5] %vm2128_vm9, %v2124_v4  ;;  %v2255_v11 = vpop.permute.xlu0 %2254  ;;  %v2159_v62 = vpop.permute.xlu1 %2158 }
 0x397   :  { %v2256_v5 = vrot.slane %v2255_v11, 6  ;;  %2142 = vst.msk [vmem:[#allocation2 + $0x2] sm:$0x1] %vm2141_vm10, %v2139_v34  ;;  %v2160_v17 = vrot.slane %v2159_v62, 6  ;;  %v3789_v34 = vpack.c.bf16 %v2375_v19, %v2374_v6  ;;  %v2655_v6 = vld [vmem:[%s5804_s7 + $0x60] sm:$0xff]  ;;  %v2656_v19 = vld [vmem:[%s5804_s7 + $0x68] sm:$0xff] }
 0x399   :  { %v2258_v38 = vsel %vm2257_vm11, %v2256_v5, %v2255_v11  ;;  %vm2192_vm11 = vcmask 850944   ;;  %v2162_v56 = vsel %vm2161_vm7, %v2160_v17, %v2159_v62  ;;  %v2362_v11 = vld [vmem:[%s5802_s5 + $0x150] sm:$0xff]  ;;  %v2363_v62 = vld [vmem:[%s5802_s5 + $0x158] sm:$0xff]  ;;  %v2380_v5 = vld [vmem:[%s5802_s5 + $0x1e0] sm:$0xff]  ;;  %vm2833_vm7 = vcmask 74752  }
 0x39a   :  { %2260 = vst.msk [vmem:[#allocation2 + $0x1] sm:$0x5] %vm2128_vm9, %v2258_v38  ;;  %v2296_v57 = vpop.permute.xlu0 %2295  ;;  %v2274_v27 = vpop.permute.xlu1 %2273  ;;  %vm5519_vm9 = vmor %vm2196_vm4, %vm2195_vm3  ;;  %v2193_v2 = vsel %vm2192_vm11, %v2191_v14, %v5494_v18  ;;  %vm2242_vm4 = vcmask 516320   ;;  %v2356_v18 = vld [vmem:[%s5802_s5 + $0x120] sm:$0xff]  ;;  %v2381_v38 = vld [vmem:[%s5802_s5 + $0x1e8] sm:$0xff] }
 0x39b   :  { %2264 = vst.msk [vmem:[#allocation2 + $0x3] sm:$0x1] %vm2141_vm10, %v2262_v1  ;;  %v2275_v39 = vrot.slane %v2274_v27, 6  ;;  %vm2204_vm10 = vcmask 385120   ;;  %v3787_v60 = vpack.c.bf16 %v2357_v49, %v2356_v18  ;;  %v2359_v1 = vld [vmem:[%s5802_s5 + $0x138] sm:$0xff] }
 0x39c   :  { %2268 = vst.msk [vmem:[#allocation2 + $0x3] sm:$0x1] %vm2148_vm14, %v2266_v20  ;;  %v2379_v20 = vld [vmem:[%s5802_s5 + $0x1d8] sm:$0xff] }
 0x39d   :  { %2272 = vst.msk [vmem:[#allocation2 + $0x3] sm:$0x1] %vm2154_vm15, %v2270_v47  ;;  %v2277_v22 = vsel %vm2276_vm0, %v2275_v39, %v2274_v27  ;;  %vm2310_vm0 = vcmask 687104   ;;  %v2361_v47 = vld [vmem:[%s5802_s5 + $0x148] sm:$0xff]  ;;  %v3797_v4 = vpack.c.bf16 %v2379_v20, %v2378_v12  ;;  %v3801_v27 = vpack.c.bf16 %v2381_v38, %v2380_v5  ;;  %v2383_v17 = vld [vmem:[%s5802_s5 + $0x1f8] sm:$0xff]  ;;  %v2739_v20 = vld [vmem:[%s5806_s9] sm:$0xff] }
 0x39e   :  { %2279 = vst.msk [vmem:[#allocation2 + $0x3] sm:$0x5] %vm5510_vm2, %v2277_v22  ;;  %v2146_v3 = vpop.permute.xlu0 %2145  ;;  %v2308_v33 = vpop.permute.xlu1 %2307  ;;  %v2365_v39 = vld [vmem:[%s5802_s5 + $0x168] sm:$0xff]  ;;  %v2654_v18 = vld [vmem:[%s5804_s7 + $0x58] sm:$0xff] }
 0x39f   :  { %2283 = vst.msk [vmem:[#allocation2 + $0x5] sm:$0x1] %vm2179_vm5, %v5490_v54  ;;  %v2309_v51 = vrot.slane %v2308_v33, 6  ;;  %v3783_v54 = vpack.c.bf16 %v2355_v48, %v2354_v41  ;;  %v3803_v22 = vpack.c.bf16 %v2365_v39, %v2364_v58  ;;  %v2649_v41 = vld [vmem:[%s5804_s7 + $0x30] sm:$0xff]  ;;  %v2650_v48 = vld [vmem:[%s5804_s7 + $0x38] sm:$0xff]  ;;  %v2743_v39 = vld [vmem:[%s5806_s9 + $0x20] sm:$0xff] }
 0x3a0   :  { %2149 = vst.msk [vmem:[#allocation2 + $0x2] sm:$0x1] %vm2148_vm14, %v2146_v3  ;;  %vm2234_vm14 = vcmask 223234   ;;  %v3805_v3 = vpack.c.bf16 %v2383_v17, %v2382_v16  ;;  %v2744_v16 = vld [vmem:[%s5806_s9 + $0x28] sm:$0xff] }
 0x3a1   :  { %2155 = vst.msk [vmem:[#allocation2 + $0x2] sm:$0x1] %vm2154_vm15, %v2152_v10  ;;  %vm2230_vm15 = vcmask 982016   ;;  %vm2235_vm3 = vmor %vm2234_vm14, %vm2233_vm13  ;;  %v2311_v26 = vsel %vm2310_vm0, %v2309_v51, %v2308_v33  ;;  %v2366_v33 = vld [vmem:[%s5802_s5 + $0x170] sm:$0xff]  ;;  %v3849_v17 = vpack.c.bf16 %v2744_v16, %v2743_v39 }
 0x3a2   :  { %2287 = vst.msk [vmem:[#allocation2 + $0x5] sm:$0x1] %vm2186_vm8, %v2285_v61  ;;  %v2215_v9 = vpop.permute.xlu0 %2214  ;;  %v2300_v55 = vpop.permute.xlu1 %2299  ;;  %v2231_v46 = vsel %vm2230_vm15, %v2229_v32, %v5501_v28  ;;  %v2358_v61 = vld [vmem:[%s5802_s5 + $0x130] sm:$0xff]  ;;  %v2376_v28 = vld [vmem:[%s5802_s5 + $0x1c0] sm:$0xff]  ;;  %v3807_v14 = vpack.c.bf16 %v2367_v15, %v2366_v33  ;;  %v2387_v32 = vld [vmem:[%s5802_s5 + $0x218] sm:$0xff] }
 0x3a3   :  { %2167 = vst.msk [vmem:[#allocation2 + $0x2] sm:$0x5] %vm5510_vm2, %v2162_v56  ;;  %vm2224_vm2 = vcmask 975520   ;;  %v3791_v10 = vpack.c.bf16 %v2359_v1, %v2358_v61  ;;  %v2385_v56 = vld [vmem:[%s5802_s5 + $0x208] sm:$0xff]  ;;  %v2747_v15 = vld [vmem:[%s5806_s9 + $0x40] sm:$0xff] }
 0x3a4   :  { %2294 = vst.msk [vmem:[#allocation2 + $0x5] sm:$0x5] %vm5519_vm9, %v2292_v35  ;;  %v2384_v35 = vld [vmem:[%s5802_s5 + $0x200] sm:$0xff] }
 0x3a5   :  { %2180 = vst.msk [vmem:[#allocation2 + $0x4] sm:$0x1] %vm2179_vm5, %v5492_v13  ;;  %vm3939_vm5 = vmmov 0  }
 0x3a6   :  { %2298 = vst.msk [vmem:[#allocation2 + $0x7] sm:$0x1] %vm2204_vm10, %v2296_v57  ;;  %v2222_v7 = vpop.permute.xlu0 %2221  ;;  %v2304_v63 = vpop.permute.xlu1 %2303  ;;  %v3799_v57 = vpack.c.bf16 %v2363_v62, %v2362_v11 }
 0x3a7   :  { %2187 = vst.msk [vmem:[#allocation2 + $0x4] sm:$0x1] %vm2186_vm8, %v5503_v53  ;;  %v2377_v53 = vld [vmem:[%s5802_s5 + $0x1c8] sm:$0xff] }
 0x3a8   :  { %2302 = vst.msk [vmem:[#allocation2 + $0x7] sm:$0x1] %vm2217_vm12, %v2300_v55  ;;  %v3793_v40 = vpack.c.bf16 %v2377_v53, %v2376_v28  ;;  %v3938_v55 = vmov 0.0|0.0   ;;  %v3002_v53 = vld [vmem:[%s5803_s6] ss:$0 sm:$0xff] }
 0x3a9   :  { %2198 = vst.msk [vmem:[#allocation2 + $0x4] sm:$0x5] %vm5519_vm9, %v2193_v2  ;;  %v2386_v2 = vld [vmem:[%s5802_s5 + $0x210] sm:$0xff] }
 0x3aa   :  { %2205 = vst.msk [vmem:[#allocation2 + $0x6] sm:$0x1] %vm2204_vm10, %v5506_v29  ;;  %v2240_v50 = vpop.permute.xlu0 %2239  ;;  %v2315_v45 = vpop.permute.xlu1 %2314  ;;  %v2360_v29 = vld [vmem:[%s5802_s5 + $0x140] sm:$0xff]  ;;  %v3813_v51 = vpack.c.bf16 %v2387_v32, %v2386_v2 }
 0x3ab   :  { %2218 = vst.msk [vmem:[#allocation2 + $0x6] sm:$0x1] %vm2217_vm12, %v2215_v9  ;;  %v3795_v21 = vpack.c.bf16 %v2361_v47, %v2360_v29  ;;  %v3810_v9 = vpack.c.bf16 %v2385_v56, %v2384_v35  ;;  %v2749_v56 = vld [vmem:[%s5806_s9 + $0x50] sm:$0xf] }
 0x3ac   :  { %2225 = vst.msk [vmem:[#allocation2 + $0x6] sm:$0x1] %vm2224_vm2, %v2222_v7  ;;  %2306 = vst.msk [vmem:[#allocation2 + $0x7] sm:$0x1] %vm2224_vm2, %v2304_v63  ;;  %v3940_v7 = vmov 0.0   ;;  %v2388_v63 = vld [vmem:[%s5802_s5 + $0x220] sm:$0xff] }
 0x3ad   :  { %2236 = vst.msk [vmem:[#allocation2 + $0x6] sm:$0x5] %vm2235_vm3, %v2231_v46  ;;  %2313 = vst.msk [vmem:[#allocation2 + $0x7] sm:$0x5] %vm2235_vm3, %v2311_v26  ;;  %v2389_v46 = vld [vmem:[%s5802_s5 + $0x228] sm:$0xff] }
 0x3ae   :  { %2243 = vst.msk [vmem:[#allocation2 + $0x8] sm:$0x1] %vm2242_vm4, %v2240_v50  ;;  %2317 = vst.msk [vmem:[#allocation2 + $0x9] sm:$0x1] %vm2242_vm4, %v2315_v45  ;;  %v3816_v26 = vpack.c.bf16 %v2389_v46, %v2388_v63  ;;  %v2390_v50 = vld [vmem:[%s5802_s5 + $0x230] sm:$0xff]  ;;  %v2391_v45 = vld [vmem:[%s5802_s5 + $0x238] sm:$0xff] }
 0x3b4   :  { %v2318_v23 = vld [vmem:[#allocation2] sm:$0xff] }
 0x3b5   :  { %v2408_v42 = vrot.slane %v2318_v23, %v5346_v44  ;;  %v2401_v52 = vcombine.high %v2318_v23, %v2318_v23  ;;  %v3819_v23 = vpack.c.bf16 %v2391_v45, %v2390_v50  ;;  %v3003_v8 = vld.sshfl [vmem:[#allocation2 + $0x8] sm:$0x3 pattern:$0x76325410] }
 0x3b7   :  { %v2416_v59 = vcombine.high %v2408_v42, %v2408_v42  ;;  %v5564_v24 = vrot.slane %v2401_v52, %v5346_v44  ;;  %v2373_v44 = vld [vmem:[%s5802_s5 + $0x1a8] sm:$0xff]  ;;  %v2645_v52 = vld [vmem:[%s5804_s7 + $0x10] sm:$0xff] }
 0x3b8   :  { %v3785_v13 = vpack.c.bf16 %v2373_v44, %v2372_v25  ;;  %v2651_v25 = vld [vmem:[%s5804_s7 + $0x40] sm:$0xff]  ;;  %v2652_v44 = vld [vmem:[%s5804_s7 + $0x48] sm:$0xff] }
 0x3b9   :  { %2496 = vmatprep.mubr.f32.mxu1 %v2416_v59  ;;  %v2417_v37 = vcombine.high %v5564_v24, %v5564_v24  ;;  %v3825_v59 = vpack.c.bf16 %v2646_v43, %v2645_v52 }
 0x3ba   :  { %2497 = vmatmul.mubr.f32.vlgmr.msra.gmra.mrb[54].mxu1 %v2408_v42  ;;  %v2644_v42 = vld [vmem:[%s5804_s7 + $0x8] sm:$0xff] }
 0x3bb   :  { %3780 = vmatpush3.bf16.msra.mxu1 %v3779_v31  ;;  %2566 = vmatprep.mubr.f32.mxu1 %v2417_v37  ;;  %v3822_v30 = vpack.c.bf16 %v2644_v42, %v2643_v0  ;;  %v2647_v31 = vld [vmem:[%s5804_s7 + $0x20] sm:$0xff]  ;;  %v3831_v37 = vpack.c.bf16 %v2650_v48, %v2649_v41 }
 0x3bc   :  { %3782 = vmatprep.subr.bf16.mxu1 %v3781_v36 }
 0x3bf   :  { %3784 = vmatpush3.bf16.msra.mxu1 %v3783_v54  ;;  %v3834_v54 = vpack.c.bf16 %v2652_v44, %v2651_v25 }
 0x3c0   :  { %3786 = vmatprep.subr.bf16.mxu1 %v3785_v13  ;;  %v2653_v13 = vld [vmem:[%s5804_s7 + $0x50] sm:$0xff] }
 0x3c1   :  { %v3837_v49 = vpack.c.bf16 %v2654_v18, %v2653_v13 }
 0x3c3   :  { %3788 = vmatpush3.bf16.msra.mxu1 %v3787_v60  ;;  %v3840_v60 = vpack.c.bf16 %v2656_v19, %v2655_v6 }
 0x3c4   :  { %3790 = vmatprep.subr.bf16.mxu1 %v3789_v34  ;;  %v2657_v34 = vld [vmem:[%s5804_s7 + $0x70] sm:$0xff] }
 0x3c7   :  { %3792 = vmatpush3.bf16.msra.mxu1 %v3791_v10 }
 0x3c8   :  { %3794 = vmatprep.subr.bf16.mxu1 %v3793_v40 }
 0x3cb   :  { %3796 = vmatpush3.bf16.msra.mxu1 %v3795_v21  ;;  %v2740_v21 = vld [vmem:[%s5806_s9 + $0x8] sm:$0xff] }
 0x3cc   :  { %3798 = vmatprep.subr.bf16.mxu1 %v3797_v4  ;;  %v3843_v5 = vpack.c.bf16 %v2740_v21, %v2739_v20 }
 0x3cf   :  { %3800 = vmatpush3.bf16.msra.mxu1 %v3799_v57  ;;  %v2741_v57 = vld [vmem:[%s5806_s9 + $0x10] sm:$0xff] }
 0x3d0   :  { %3802 = vmatprep.subr.bf16.mxu1 %v3801_v27  ;;  %v2742_v27 = vld [vmem:[%s5806_s9 + $0x18] sm:$0xff] }
 0x3d1   :  { %v3846_v58 = vpack.c.bf16 %v2742_v27, %v2741_v57 }
 0x3d3   :  { %3804 = vmatpush3.bf16.msra.mxu1 %v3803_v22  ;;  %v2745_v22 = vld [vmem:[%s5806_s9 + $0x30] sm:$0xff] }
 0x3d4   :  { %3806 = vmatprep.subr.bf16.mxu1 %v3805_v3  ;;  %v2746_v3 = vld [vmem:[%s5806_s9 + $0x38] sm:$0xff] }
 0x3d5   :  { %v3852_v33 = vpack.c.bf16 %v2746_v3, %v2745_v22 }
 0x3d7   :  { %3808 = vmatpush3.bf16.msra.mxu1 %v3807_v14  ;;  %v2748_v14 = vld [vmem:[%s5806_s9 + $0x48] sm:$0xff]  ;;  %s3896_s9 = scalar_lea.vmem %s2842_s24, 32 }
 0x3d8   :  { %3809 = vmatprep.subr.bf16.mxu1 %v3938_v55  ;;  %v3855_v35 = vpack.c.bf16 %v2748_v14, %v2747_v15  ;;  %p3897_p0 = scmp.ne.s32.totalorder %s2842_s24, %s3896_s9  ;;  %p3902_p2 = scmp.lt.s32.totalorder %s3896_s9, %s3896_s9 }
 0x3da   :  { %2567 = vmatmul.mubr.f32.vlgmr.msra.gmra.mrb[56].mxu1 %v5564_v24  ;;  %v2648_v24 = vld [vmem:[%s5804_s7 + $0x28] sm:$0xff]  ;;  %p3903_p3 = por %p3902_p2, %p3901_p1 }
 0x3db   :  { %3811 = vmatpush3.bf16.msra.mxu1 %v3810_v9  ;;  %3620 = vmatprep.mubr.msk.f32.mxu1 %vm3939_vm5, %v3940_v7  ;;  %v3828_v36 = vpack.c.bf16 %v2648_v24, %v2647_v31  ;;  %v3005_v9 = vld [vmem:[%s5805_s8] ss:$0 sm:$0xff] }
 0x3dc   :  { %3812 = vmatprep.subr.bf16.mxu1 %v3938_v55  ;;  %p3904_p4 = pnand %p3903_p3, %p3897_p0 }
 0x3df   :  { %3814 = vmatpush3.bf16.msra.mxu1 %v3813_v51 }
 0x3e0   :  { %3815 = vmatprep.subr.bf16.mxu1 %v3938_v55 }
 0x3e3   :  { %3817 = vmatpush3.bf16.msra.mxu1 %v3816_v26 }
 0x3e4   :  { %3818 = vmatprep.subr.bf16.mxu1 %v3938_v55 }
 0x3e7   :  { %3820 = vmatpush3.bf16.msra.mxu1 %v3819_v23 }
 0x3e8   :  { %3821 = vmatprep.subr.bf16.mxu1 %v3938_v55 }
 0x3ea   :  { %3621 = vmatmul.mubr.msk.f32.vlgmr.msra.gmra.mrb[58].mxu1 %vm2429_vm6, %v3003_v8 }
 0x3eb   :  { %3653 = vmatprep.mubr.msk.f32.mxu1 %vm3939_vm5, %v3940_v7  ;;  %3823 = vmatpush3.bf16.msra.mxu1 %v3822_v30 }
 0x3ec   :  { %3824 = vmatprep.subr.bf16.mxu1 %v3938_v55 }
 0x3ef   :  { %3826 = vmatpush3.bf16.msra.mxu1 %v3825_v59 }
 0x3f0   :  { %3827 = vmatprep.subr.bf16.mxu1 %v3938_v55 }
 0x3f3   :  { %3829 = vmatpush3.bf16.msra.mxu1 %v3828_v36 }
 0x3f4   :  { %3830 = vmatprep.subr.bf16.mxu1 %v3938_v55 }
 0x3f7   :  { %3832 = vmatpush3.bf16.msra.mxu1 %v3831_v37 }
 0x3f8   :  { %3833 = vmatprep.subr.bf16.mxu1 %v3938_v55 }
 0x3fb   :  { %3835 = vmatpush3.bf16.msra.mxu1 %v3834_v54 }
 0x3fc   :  { %3836 = vmatprep.subr.bf16.mxu1 %v3938_v55 }
 0x3ff   :  { %3838 = vmatpush3.bf16.msra.mxu1 %v3837_v49 }
 0x400   :  { %3839 = vmatprep.subr.bf16.mxu1 %v3938_v55 }
 0x403   :  { %3841 = vmatpush3.bf16.msra.mxu1 %v3840_v60 }
 0x404   :  { %3651 = vmatprep.subr.mxu1 %v3940_v7 }
 0x407   :  { %3652 = vmatpush3.msra.mxu1 %v2657_v34 }
 0x408   :  { %3842 = vmatprep.subr.bf16.mxu1 %v3938_v55 }
 0x48d   :  { %v3267_v61 = vpop.f32.mrb[54].mxu1 }
 0x48e   :  { %v3268_v1 = vpop.f32.mrb[55].mxu1 }
 0x48f   :  { %v3269_v28 = vadd.f32 %v3268_v1, %v3267_v61 }
 0x491   :  { %v2499_v29 = vadd.f32 %v3269_v28, %v3002_v53 }
 0x4ad   :  { %v3302_v10 = vpop.f32.mrb[56].mxu1 }
 0x4ae   :  { %v3303_v40 = vpop.f32.mrb[57].mxu1 }
 0x4af   :  { %v3304_v47 = vadd.f32 %v3303_v40, %v3302_v10 }
 0x4b1   :  { %v2569_v12 = vadd.f32 %v3304_v47, %v2499_v29 }
 0x4bd   :  { %v2638_v4 = vpop.f32.mrb[58].mxu1 }
 0x4be   :  { %v2639_v11 = vadd.f32 %v2638_v4, %v2569_v12  ;;  %v3622_v62 = vpop.f32.mrb[59].mxu1 }
 0x4c0   :  { %v2642_v38 = vmax.f32 %v2639_v11, 0.0 }
 0x4c2   :  { %3654 = vmatmul.mubr.msk.f32.vlgmr.msra.gmra.mrb[60].mxu1 %vm2230_vm15, %v2642_v38 }
 0x4c3   :  { %3844 = vmatpush3.bf16.msra.mxu1 %v3843_v5  ;;  %3678 = vmatprep.mubr.msk.f32.mxu1 %vm3939_vm5, %v3940_v7 }
 0x4c4   :  { %3845 = vmatprep.subr.bf16.mxu1 %v3938_v55 }
 0x4c7   :  { %3847 = vmatpush3.bf16.msra.mxu1 %v3846_v58 }
 0x4c8   :  { %3848 = vmatprep.subr.bf16.mxu1 %v3938_v55 }
 0x4cb   :  { %3850 = vmatpush3.bf16.msra.mxu1 %v3849_v17 }
 0x4cc   :  { %3851 = vmatprep.subr.bf16.mxu1 %v3938_v55 }
 0x4cf   :  { %3853 = vmatpush3.bf16.msra.mxu1 %v3852_v33 }
 0x4d0   :  { %3854 = vmatprep.subr.bf16.mxu1 %v3938_v55 }
 0x4d3   :  { %3856 = vmatpush3.bf16.msra.mxu1 %v3855_v35 }
 0x4d4   :  { %3676 = vmatprep.subr.mxu1 %v3940_v7  ;;  %v3007_v7 = vld [vmem:[%s5807_s10] ss:$0 sm:$0xff] }
 0x4d7   :  { %3677 = vmatpush3.msk.msra.mxu1 %vm629_vm1, %v2749_v56 }
 0x595   :  { %v2734_v55 = vpop.f32.mrb[60].mxu1 }
 0x596   :  { %v2735_v2 = vadd.f32 %v3005_v9, %v2734_v55  ;;  %v3655_v32 = vpop.f32.mrb[61].mxu1 }
 0x598   :  { %v2738_v51 = vmax.f32 %v2735_v2, 0.0 }
 0x59a   :  { %3679 = vmatmul.mubr.msk.f32.vlgmr.msra.gmra.mrb[62].mxu1 %vm2310_vm0, %v2738_v51 }
 0x66d   :  { %v2829_v63 = vpop.f32.mrb[62].mxu1 }
 0x66e   :  { %v2830_v46 = vadd.f32 %v3007_v7, %v2829_v63  ;;  %v3680_v26 = vpop.f32.mrb[63].mxu1 }
 0x670   :  { %2834 = vst.msk [vmem:[#allocation3] sm:$0x3] %vm2833_vm7, %v2830_v46 }
 0x671   :  { %3907 = shalt.err (!%p3904_p4)
}
 0x672   :  { %s3908_s7 = scalar_lea.hbm %s5808_s11, 32 }
 0x673   :  { %p3909_p5 = scmp.ne.s32.totalorder %s5808_s11, %s3908_s7  ;;  %p3912_p6 = scmp.lt.u32.totalorder %s3908_s7, %s5808_s11 }
 0x675   :  { %p3914_p7 = pnand %p3912_p6, %p3909_p5 }
 0x677   :  { %3917 = shalt.err (!%p3914_p7)
}
 0x678   :  { %2844 = dma.vmem_to_hbm [thread:$0]  %s2842_s24, 32, %s5808_s11, [#allocation4]  }
 0x679   :  { %3918 = dma.done.wait [#allocation4], 32  }
 0x67a   :  { %3919 = vsyncadd [#allocation4], 4294967264 }
 0x67b   :  { %2848 = vsyncpa [#allocation4], 1 }

</bundles_post_ra>
